<compile_context>
chip_gen: v7x
topology: tpu7x:2x2x1
jax: 0.10.0
libtpu: 0.0.40
codegen_flags: <defaults>
</compile_context>

<pallas_src>
import functools

import numpy as np
import jax
import jax.numpy as jnp
from jax.experimental import pallas as pl
from jax.experimental.pallas import tpu as pltpu

SCORE_THRESH = 0.05
NMS_THRESH = 0.5
DETECTIONS_PER_IMG = 100
BBOX_XFORM_CLIP = float(np.log(1000.0 / 16.0))
WX, WY, WW, WH = 10.0, 10.0, 5.0, 5.0   # BoxCoder weights
TO_REMOVE = 1.0


def _round_up(x, m):
    return ((x + m - 1) // m) * m


# ----------------------------------------------------------------------------
# Kernel: softmax + BoxCoder.decode + clip_to_image for one row tile.
# ----------------------------------------------------------------------------
def _postproc_kernel(logits_ref, reg_ref, prop_ref, wh_ref, prob_ref, boxes_ref):
    # ---------------- softmax over classes (unpadded C lanes) ----------------
    logits = logits_ref[...].astype(jnp.float32)
    m = jnp.max(logits, axis=-1, keepdims=True)
    e = jnp.exp(logits - m)
    prob_ref[...] = (e / jnp.sum(e, axis=-1, keepdims=True)).astype(prob_ref.dtype)

    # -------------- per-row decode prologue from raw proposals ---------------
    p = prop_ref[...].astype(jnp.float32)                # (tile, 4) xyxy
    widths = p[:, 2:3] - p[:, 0:1] + TO_REMOVE
    heights = p[:, 3:4] - p[:, 1:2] + TO_REMOVE
    ctr_x = p[:, 0:1] + 0.5 * widths
    ctr_y = p[:, 1:2] + 0.5 * heights
    wh = wh_ref[...].astype(jnp.float32)                 # (tile, 2) = [w-1, h-1]
    x_max, y_max = wh[:, 0:1], wh[:, 1:2]

    # ---------- row-invariant lane constants, built once at (1, 4C) ----------
    r = reg_ref.shape[1]                                 # 4 * num_classes
    lane = jax.lax.broadcasted_iota(jnp.int32, (1, r), 1)
    mod4 = lane & 3
    is_xy = mod4 < 2                                     # dx/dy lanes -> x1/y1
    is_x = (lane & 1) == 0                               # even lanes = x coords
    inv_w = jnp.where(mod4 == 0, 1.0 / WX,
            jnp.where(mod4 == 1, 1.0 / WY,
            jnp.where(mod4 == 2, 1.0 / WW, 1.0 / WH)))

    # -------- BoxCoder.decode on the native interleaved (tile, 4C) layout ----
    d = reg_ref[...].astype(jnp.float32) * inv_w
    size = jnp.where(is_x, widths, heights)
    ctr = jnp.where(is_x, ctr_x, ctr_y)

    pred_ctr = d * size + ctr                            # valid on dx/dy lanes
    # NOTE: exp also runs on the dx/dy lanes (2x the needed EUP pushes); the
    # kernel is HBM-bound so this never binds.  Compact dw/dh lanes if it does.
    pred_half = 0.5 * jnp.exp(jnp.minimum(d, BBOX_XFORM_CLIP)) * size

    # Align 0.5*pred_w/h with the center lanes (and vice versa): +-2 lane roll.
    half_at_xy = jnp.roll(pred_half, -2, axis=1)         # out[i] = in[i + 2]
    ctr_at_wh = jnp.roll(pred_ctr, 2, axis=1)            # out[i] = in[i - 2]

    boxes = jnp.where(is_xy,
                      pred_ctr - half_at_xy,             # x1 / y1
                      ctr_at_wh + pred_half - TO_REMOVE)  # x2 / y2

    # clip_to_image(remove_empty=False): x -> [0, w-1], y -> [0, h-1]
    upper = jnp.where(is_x, x_max, y_max)
    boxes_ref[...] = jnp.minimum(jnp.maximum(boxes, 0.0), upper).astype(boxes_ref.dtype)


# ----------------------------------------------------------------------------
# Device wrapper: pallas_call with dense, unpadded blocks.
# ----------------------------------------------------------------------------
@functools.partial(jax.jit, static_argnames=("tile_rows",))
def _postprocess_device(class_logits, box_regression, concat_boxes, image_wh,
                        *, tile_rows):
    n, c = class_logits.shape
    r = box_regression.shape[1]
    grid = (pl.cdiv(n, tile_rows),)

    return pl.pallas_call(
        _postproc_kernel,
        out_shape=(jax.ShapeDtypeStruct((n, c), jnp.float32),
                   jax.ShapeDtypeStruct((n, r), jnp.float32)),
        grid_spec=pltpu.PrefetchScalarGridSpec(
            num_scalar_prefetch=0,
            grid=grid,
            in_specs=[
                pl.BlockSpec((tile_rows, c), lambda i: (i, 0)),
                pl.BlockSpec((tile_rows, r), lambda i: (i, 0)),
                pl.BlockSpec((tile_rows, 4), lambda i: (i, 0)),
                pl.BlockSpec((tile_rows, 2), lambda i: (i, 0)),
            ],
            out_specs=(
                pl.BlockSpec((tile_rows, c), lambda i: (i, 0)),
                pl.BlockSpec((tile_rows, r), lambda i: (i, 0)),
            ),
        ),
        compiler_params=pltpu.CompilerParams(
            dimension_semantics=("parallel",)),   # shards row tiles over v7x's 2 TCs
    )(class_logits, box_regression, concat_boxes, image_wh)


def postprocess_pallas(class_logits, box_regression, concat_boxes,
                       image_sizes, boxes_per_image, *, tile_rows=None):
    """softmax + BoxCoder.decode + clip_to_image, fused in one Pallas kernel.

    Supports ragged boxes_per_image (per-row image extents expanded on host).
    Returns (class_prob (N,C), decoded_boxes (N,4C) in the reference layout).
    """
    n, c = class_logits.shape
    assert box_regression.shape == (n, 4 * c)
    assert sum(boxes_per_image) == n
    if tile_rows is None:
        # Big tiles amortize per-step overhead; keep >= 4 grid steps so the
        # parallel row axis stays shardable over both v7x TensorCores, and the
        # double-buffered working set stays under v5e's 16 MiB scoped VMEM.
        tile_rows = int(min(1024, max(8, _round_up(-(-n // 4), 8))))
    w_row = np.repeat(np.asarray([s[0] for s in image_sizes], np.float32),
                      boxes_per_image)
    h_row = np.repeat(np.asarray([s[1] for s in image_sizes], np.float32),
                      boxes_per_image)
    image_wh = jnp.asarray(np.stack([w_row - 1.0, h_row - 1.0], axis=1))
    return _postprocess_device(class_logits, box_regression, concat_boxes,
                               image_wh, tile_rows=int(tile_rows))


# ----------------------------------------------------------------------------
# Host-side glue: score threshold + per-class greedy NMS + detections cap.
# TODO(synk): greedy NMS / dynamic-shaped top-k has no clean static-shape
# Pallas equivalent; kept as host post-processing on kernel outputs.
# ----------------------------------------------------------------------------
def _nms_numpy(boxes, scores, thresh):
    if boxes.shape[0] == 0:
        return np.zeros((0,), dtype=np.int64)
    x1, y1, x2, y2 = boxes[:, 0], boxes[:, 1], boxes[:, 2], boxes[:, 3]
    areas = (x2 - x1 + 1.0) * (y2 - y1 + 1.0)
    order = np.argsort(-scores, kind="stable")
    keep = []
    while order.size > 0:
        i = order[0]
        keep.append(i)
        xx1 = np.maximum(x1[i], x1[order[1:]])
        yy1 = np.maximum(y1[i], y1[order[1:]])
        xx2 = np.minimum(x2[i], x2[order[1:]])
        yy2 = np.minimum(y2[i], y2[order[1:]])
        w = np.maximum(0.0, xx2 - xx1 + 1.0)
        h = np.maximum(0.0, yy2 - yy1 + 1.0)
        inter = w * h
        iou = inter / (areas[i] + areas[order[1:]] - inter)
        order = order[1:][iou <= thresh]
    return np.asarray(keep, dtype=np.int64)


def filter_results_host(class_prob, decoded_boxes, boxes_per_image):
    """Mirrors PostProcessor.filter_results on the kernel outputs."""
    prob = np.asarray(class_prob)
    boxes4c = np.asarray(decoded_boxes)
    num_classes = prob.shape[1]
    inds_all = prob > SCORE_THRESH
    results, start = [], 0
    for n in boxes_per_image:
        sl = slice(start, start + n)
        start += n
        p, b, m = prob[sl], boxes4c[sl], inds_all[sl]
        all_boxes, all_scores, all_labels = [], [], []
        for j in range(1, num_classes):     # skip background class 0
            inds = np.nonzero(m[:, j])[0]
            boxes_j = b[inds, 4 * j:4 * (j + 1)]
            scores_j = p[inds, j]
            keep = _nms_numpy(boxes_j, scores_j, NMS_THRESH)
            all_boxes.append(boxes_j[keep])
            all_scores.append(scores_j[keep])
            all_labels.append(np.full((keep.shape[0],), j, dtype=np.int64))
        boxes_cat = np.concatenate(all_boxes, 0) if all_boxes else np.zeros((0, 4), np.float32)
        scores_cat = np.concatenate(all_scores, 0) if all_scores else np.zeros((0,), np.float32)
        labels_cat = np.concatenate(all_labels, 0) if all_labels else np.zeros((0,), np.int64)
        nd = boxes_cat.shape[0]
        if nd > DETECTIONS_PER_IMG > 0:
            kth = np.partition(scores_cat, nd - DETECTIONS_PER_IMG)[nd - DETECTIONS_PER_IMG]
            keep = np.nonzero(scores_cat >= kth)[0]
            boxes_cat, scores_cat, labels_cat = boxes_cat[keep], scores_cat[keep], labels_cat[keep]
        results.append({"boxes": boxes_cat, "scores": scores_cat, "labels": labels_cat})
    return results


# ----------------------------------------------------------------------------
# Pure-numpy reference of the kernel's hot path (for the sanity check).
# ----------------------------------------------------------------------------
def _reference_numpy(class_logits, box_regression, concat_boxes,
                     image_sizes, boxes_per_image):
    logits = np.asarray(class_logits, np.float32)
    reg = np.asarray(box_regression, np.float32)
    boxes = np.asarray(concat_boxes, np.float32)
    e = np.exp(logits - logits.max(-1, keepdims=True))
    prob = e / e.sum(-1, keepdims=True)

    widths = boxes[:, 2:3] - boxes[:, 0:1] + 1.0
    heights = boxes[:, 3:4] - boxes[:, 1:2] + 1.0
    ctr_x = boxes[:, 0:1] + 0.5 * widths
    ctr_y = boxes[:, 1:2] + 0.5 * heights
    dx, dy = reg[:, 0::4] / WX, reg[:, 1::4] / WY
    dw = np.minimum(reg[:, 2::4] / WW, BBOX_XFORM_CLIP)
    dh = np.minimum(reg[:, 3::4] / WH, BBOX_XFORM_CLIP)
    pcx, pcy = dx * widths + ctr_x, dy * heights + ctr_y
    pw, ph = np.exp(dw) * widths, np.exp(dh) * heights

    out = np.zeros_like(reg)
    out[:, 0::4] = pcx - 0.5 * pw
    out[:, 1::4] = pcy - 0.5 * ph
    out[:, 2::4] = pcx + 0.5 * pw - 1.0
    out[:, 3::4] = pcy + 0.5 * ph - 1.0

    w_row = np.repeat(np.asarray([s[0] for s in image_sizes], np.float32), boxes_per_image)
    h_row = np.repeat(np.asarray([s[1] for s in image_sizes], np.float32), boxes_per_image)
    out[:, 0::4] = np.clip(out[:, 0::4], 0.0, (w_row - 1.0)[:, None])
    out[:, 2::4] = np.clip(out[:, 2::4], 0.0, (w_row - 1.0)[:, None])
    out[:, 1::4] = np.clip(out[:, 1::4], 0.0, (h_row - 1.0)[:, None])
    out[:, 3::4] = np.clip(out[:, 3::4], 0.0, (h_row - 1.0)[:, None])
    return prob, out


if __name__ == "__main__":
    key = jax.random.PRNGKey(0)
    k1, k2, k3, k4 = jax.random.split(key, 4)

    num_classes = 8
    boxes_per_image = [320, 192]            # ragged across the two images
    image_sizes = [(64, 48), (80, 60)]      # (width, height) per image
    N = sum(boxes_per_image)

    class_logits = jax.random.normal(k1, (N, num_classes), dtype=jnp.float32)
    box_regression = 0.5 * jax.random.normal(k2, (N, 4 * num_classes), dtype=jnp.float32)
    xy = jax.random.uniform(k3, (N, 2), minval=0.0, maxval=30.0)
    wh = jax.random.uniform(k4, (N, 2), minval=4.0, maxval=20.0)
    concat_boxes = jnp.concatenate([xy, xy + wh], axis=1).astype(jnp.float32)

    # Auto tile picker -> 128-row tiles here (4 grid steps).
    prob, boxes4c = postprocess_pallas(class_logits, box_regression, concat_boxes,
                                       image_sizes, boxes_per_image)
    prob, boxes4c = jax.block_until_ready((prob, boxes4c))
    prob_np, boxes_np = np.asarray(prob), np.asarray(boxes4c)

    # Sanity checks against the pure-numpy reference of the hot path.
    ref_prob, ref_boxes = _reference_numpy(class_logits, box_regression,
                                           concat_boxes, image_sizes, boxes_per_image)
    np.testing.assert_allclose(prob_np.sum(-1), 1.0, atol=1e-5)
    np.testing.assert_allclose(prob_np, ref_prob, rtol=1e-4, atol=1e-6)
    np.testing.assert_allclose(boxes_np, ref_boxes, rtol=1e-4, atol=1e-3)

    results = filter_results_host(prob_np, boxes_np, boxes_per_image)
    assert len(results) == len(boxes_per_image)
    print("KERNEL_OK")
</pallas_src>

<mosaic_0001>
module attributes {stable_mosaic.version = 11 : i64} {
  func.func @_postproc_kernel(%arg0: i32, %arg1: memref<128x8xf32, #tpu.memory_space<vmem>>, %arg2: memref<128x32xf32, #tpu.memory_space<vmem>>, %arg3: memref<128x4xf32, #tpu.memory_space<vmem>>, %arg4: memref<128x2xf32, #tpu.memory_space<vmem>>, %arg5: memref<128x8xf32, #tpu.memory_space<vmem>>, %arg6: memref<128x32xf32, #tpu.memory_space<vmem>>) attributes {dimension_semantics = [#tpu.dimension_semantics<parallel>], iteration_bounds = array<i64: 4>, scalar_prefetch = 0 : i64, scratch_operands = 0 : i64, tpu.core_type = #tpu.core_type<tc>, window_params = [{transform_indices = @transform_0, window_bounds = array<i64: 128, 8>}, {transform_indices = @transform_1, window_bounds = array<i64: 128, 32>}, {transform_indices = @transform_2, window_bounds = array<i64: 128, 4>}, {transform_indices = @transform_3, window_bounds = array<i64: 128, 2>}, {transform_indices = @transform_4, window_bounds = array<i64: 128, 8>}, {transform_indices = @transform_5, window_bounds = array<i64: 128, 32>}]} {
    %c0 = arith.constant 0 : index
    %c0_0 = arith.constant 0 : index
    %0 = vector.load %arg1[%c0, %c0_0] : memref<128x8xf32, #tpu.memory_space<vmem>>, vector<128x8xf32>
    %cst = arith.constant dense<0xFF800000> : vector<128xf32>
    %1 = vector.multi_reduction <maximumf>, %0, %cst [1] : vector<128x8xf32> to vector<128xf32>
    %2 = vector.shape_cast %1 : vector<128xf32> to vector<128x1xf32>
    %3 = vector.broadcast %2 : vector<128x1xf32> to vector<128x8xf32>
    %4 = arith.subf %0, %3 : vector<128x8xf32>
    %5 = math.exp %4 : vector<128x8xf32>
    %cst_1 = arith.constant dense<0.000000e+00> : vector<128xf32>
    %6 = vector.multi_reduction <add>, %5, %cst_1 [1] : vector<128x8xf32> to vector<128xf32>
    %7 = vector.shape_cast %6 : vector<128xf32> to vector<128x1xf32>
    %8 = vector.broadcast %7 : vector<128x1xf32> to vector<128x8xf32>
    %9 = arith.divf %5, %8 : vector<128x8xf32>
    %c0_2 = arith.constant 0 : index
    %c0_3 = arith.constant 0 : index
    %10 = vector.load %arg5[%c0_2, %c0_3] : memref<128x8xf32, #tpu.memory_space<vmem>>, vector<128x8xf32>
    tpu.vector_store %arg5[%c0_2, %c0_3], %9 {strides = array<i32>} : memref<128x8xf32, #tpu.memory_space<vmem>>, vector<128x8xf32>,
    %c0_4 = arith.constant 0 : index
    %c0_5 = arith.constant 0 : index
    %11 = vector.load %arg3[%c0_4, %c0_5] : memref<128x4xf32, #tpu.memory_space<vmem>>, vector<128x4xf32>
    %12 = vector.extract_strided_slice %11 {offsets = [0, 2], sizes = [128, 1], strides = [1, 1]} : vector<128x4xf32> to vector<128x1xf32>
    %13 = vector.extract_strided_slice %11 {offsets = [0, 0], sizes = [128, 1], strides = [1, 1]} : vector<128x4xf32> to vector<128x1xf32>
    %14 = arith.subf %12, %13 : vector<128x1xf32>
    %cst_6 = arith.constant 1.000000e+00 : f32
    %15 = vector.broadcast %cst_6 : f32 to vector<128x1xf32>
    %16 = arith.addf %14, %15 : vector<128x1xf32>
    %17 = vector.extract_strided_slice %11 {offsets = [0, 3], sizes = [128, 1], strides = [1, 1]} : vector<128x4xf32> to vector<128x1xf32>
    %18 = vector.extract_strided_slice %11 {offsets = [0, 1], sizes = [128, 1], strides = [1, 1]} : vector<128x4xf32> to vector<128x1xf32>
    %19 = arith.subf %17, %18 : vector<128x1xf32>
    %cst_7 = arith.constant 1.000000e+00 : f32
    %20 = vector.broadcast %cst_7 : f32 to vector<128x1xf32>
    %21 = arith.addf %19, %20 : vector<128x1xf32>
    %22 = vector.extract_strided_slice %11 {offsets = [0, 0], sizes = [128, 1], strides = [1, 1]} : vector<128x4xf32> to vector<128x1xf32>
    %cst_8 = arith.constant 5.000000e-01 : f32
    %23 = vector.broadcast %cst_8 : f32 to vector<128x1xf32>
    %24 = arith.mulf %23, %16 : vector<128x1xf32>
    %25 = arith.addf %22, %24 : vector<128x1xf32>
    %26 = vector.extract_strided_slice %11 {offsets = [0, 1], sizes = [128, 1], strides = [1, 1]} : vector<128x4xf32> to vector<128x1xf32>
    %cst_9 = arith.constant 5.000000e-01 : f32
    %27 = vector.broadcast %cst_9 : f32 to vector<128x1xf32>
    %28 = arith.mulf %27, %21 : vector<128x1xf32>
    %29 = arith.addf %26, %28 : vector<128x1xf32>
    %c0_10 = arith.constant 0 : index
    %c0_11 = arith.constant 0 : index
    %30 = vector.load %arg4[%c0_10, %c0_11] : memref<128x2xf32, #tpu.memory_space<vmem>>, vector<128x2xf32>
    %31 = vector.extract_strided_slice %30 {offsets = [0, 0], sizes = [128, 1], strides = [1, 1]} : vector<128x2xf32> to vector<128x1xf32>
    %32 = vector.extract_strided_slice %30 {offsets = [0, 1], sizes = [128, 1], strides = [1, 1]} : vector<128x2xf32> to vector<128x1xf32>
    %33 = tpu.iota {dimensions = array<i32: 1>} : vector<1x32xi32>
    %c3_i32 = arith.constant 3 : i32
    %34 = vector.broadcast %c3_i32 : i32 to vector<1x32xi32>
    %35 = arith.andi %33, %34 : vector<1x32xi32>
    %c2_i32 = arith.constant 2 : i32
    %36 = vector.broadcast %c2_i32 : i32 to vector<1x32xi32>
    %37 = arith.cmpi slt, %35, %36 : vector<1x32xi32>
    %c1_i32 = arith.constant 1 : i32
    %38 = vector.broadcast %c1_i32 : i32 to vector<1x32xi32>
    %39 = arith.andi %33, %38 : vector<1x32xi32>
    %c0_i32 = arith.constant 0 : i32
    %40 = vector.broadcast %c0_i32 : i32 to vector<1x32xi32>
    %41 = arith.cmpi eq, %39, %40 : vector<1x32xi32>
    %c0_i32_12 = arith.constant 0 : i32
    %42 = vector.broadcast %c0_i32_12 : i32 to vector<1x32xi32>
    %43 = arith.cmpi eq, %35, %42 : vector<1x32xi32>
    %c1_i32_13 = arith.constant 1 : i32
    %44 = vector.broadcast %c1_i32_13 : i32 to vector<1x32xi32>
    %45 = arith.cmpi eq, %35, %44 : vector<1x32xi32>
    %c2_i32_14 = arith.constant 2 : i32
    %46 = vector.broadcast %c2_i32_14 : i32 to vector<1x32xi32>
    %47 = arith.cmpi eq, %35, %46 : vector<1x32xi32>
    %cst_15 = arith.constant 2.000000e-01 : f32
    %cst_16 = arith.constant 2.000000e-01 : f32
    %48 = vector.broadcast %cst_15 : f32 to vector<1x32xf32>
    %49 = vector.broadcast %cst_16 : f32 to vector<1x32xf32>
    %50 = arith.select %47, %48, %49 : vector<1x32xi1>, vector<1x32xf32>
    %cst_17 = arith.constant 1.000000e-01 : f32
    %51 = vector.broadcast %cst_17 : f32 to vector<1x32xf32>
    %52 = arith.select %45, %51, %50 : vector<1x32xi1>, vector<1x32xf32>
    %cst_18 = arith.constant 1.000000e-01 : f32
    %53 = vector.broadcast %cst_18 : f32 to vector<1x32xf32>
    %54 = arith.select %43, %53, %52 : vector<1x32xi1>, vector<1x32xf32>
    %c0_19 = arith.constant 0 : index
    %c0_20 = arith.constant 0 : index
    %55 = vector.load %arg2[%c0_19, %c0_20] : memref<128x32xf32, #tpu.memory_space<vmem>>, vector<128x32xf32>
    %56 = vector.broadcast %54 : vector<1x32xf32> to vector<128x32xf32>
    %57 = arith.mulf %55, %56 : vector<128x32xf32>
    %58 = vector.shape_cast %41 : vector<1x32xi1> to vector<1x32xi1>
    %59 = vector.broadcast %58 : vector<1x32xi1> to vector<128x32xi1>
    %60 = vector.shape_cast %16 : vector<128x1xf32> to vector<128x1xf32>
    %61 = vector.broadcast %60 : vector<128x1xf32> to vector<128x32xf32>
    %62 = vector.shape_cast %21 : vector<128x1xf32> to vector<128x1xf32>
    %63 = vector.broadcast %62 : vector<128x1xf32> to vector<128x32xf32>
    %64 = arith.select %59, %61, %63 : vector<128x32xi1>, vector<128x32xf32>
    %65 = vector.shape_cast %41 : vector<1x32xi1> to vector<1x32xi1>
    %66 = vector.broadcast %65 : vector<1x32xi1> to vector<128x32xi1>
    %67 = vector.shape_cast %25 : vector<128x1xf32> to vector<128x1xf32>
    %68 = vector.broadcast %67 : vector<128x1xf32> to vector<128x32xf32>
    %69 = vector.shape_cast %29 : vector<128x1xf32> to vector<128x1xf32>
    %70 = vector.broadcast %69 : vector<128x1xf32> to vector<128x32xf32>
    %71 = arith.select %66, %68, %70 : vector<128x32xi1>, vector<128x32xf32>
    %72 = arith.mulf %57, %64 : vector<128x32xf32>
    %73 = arith.addf %72, %71 : vector<128x32xf32>
    %cst_21 = arith.constant 4.13516665 : f32
    %74 = vector.broadcast %cst_21 : f32 to vector<128x32xf32>
    %75 = arith.minimumf %57, %74 : vector<128x32xf32>
    %76 = math.exp %75 : vector<128x32xf32>
    %cst_22 = arith.constant 5.000000e-01 : f32
    %77 = vector.broadcast %cst_22 : f32 to vector<128x32xf32>
    %78 = arith.mulf %77, %76 : vector<128x32xf32>
    %79 = arith.mulf %78, %64 : vector<128x32xf32>
    %80 = vector.extract_strided_slice %79 {offsets = [0, 2], sizes = [128, 30], strides = [1, 1]} : vector<128x32xf32> to vector<128x30xf32>
    %81 = vector.extract_strided_slice %79 {offsets = [0, 0], sizes = [128, 2], strides = [1, 1]} : vector<128x32xf32> to vector<128x2xf32>
    %82 = tpu.concatenate %80, %81 in 1 : vector<128x30xf32>, vector<128x2xf32> -> vector<128x32xf32>
    %83 = vector.extract_strided_slice %73 {offsets = [0, 30], sizes = [128, 2], strides = [1, 1]} : vector<128x32xf32> to vector<128x2xf32>
    %84 = vector.extract_strided_slice %73 {offsets = [0, 0], sizes = [128, 30], strides = [1, 1]} : vector<128x32xf32> to vector<128x30xf32>
    %85 = tpu.concatenate %83, %84 in 1 : vector<128x2xf32>, vector<128x30xf32> -> vector<128x32xf32>
    %86 = arith.subf %73, %82 : vector<128x32xf32>
    %87 = arith.addf %85, %79 : vector<128x32xf32>
    %cst_23 = arith.constant 1.000000e+00 : f32
    %88 = vector.broadcast %cst_23 : f32 to vector<128x32xf32>
    %89 = arith.subf %87, %88 : vector<128x32xf32>
    %90 = vector.shape_cast %37 : vector<1x32xi1> to vector<1x32xi1>
    %91 = vector.broadcast %90 : vector<1x32xi1> to vector<128x32xi1>
    %92 = arith.select %91, %86, %89 : vector<128x32xi1>, vector<128x32xf32>
    %93 = vector.shape_cast %41 : vector<1x32xi1> to vector<1x32xi1>
    %94 = vector.broadcast %93 : vector<1x32xi1> to vector<128x32xi1>
    %95 = vector.shape_cast %31 : vector<128x1xf32> to vector<128x1xf32>
    %96 = vector.broadcast %95 : vector<128x1xf32> to vector<128x32xf32>
    %97 = vector.shape_cast %32 : vector<128x1xf32> to vector<128x1xf32>
    %98 = vector.broadcast %97 : vector<128x1xf32> to vector<128x32xf32>
    %99 = arith.select %94, %96, %98 : vector<128x32xi1>, vector<128x32xf32>
    %cst_24 = arith.constant 0.000000e+00 : f32
    %100 = vector.broadcast %cst_24 : f32 to vector<128x32xf32>
    %101 = arith.maximumf %92, %100 : vector<128x32xf32>
    %102 = arith.minimumf %101, %99 : vector<128x32xf32>
    %c0_25 = arith.constant 0 : index
    %c0_26 = arith.constant 0 : index
    %103 = vector.load %arg6[%c0_25, %c0_26] : memref<128x32xf32, #tpu.memory_space<vmem>>, vector<128x32xf32>
    tpu.vector_store %arg6[%c0_25, %c0_26], %102 {strides = array<i32>} : memref<128x32xf32, #tpu.memory_space<vmem>>, vector<128x32xf32>,
    return
  }
  func.func @transform_0(%arg0: i32) -> (i32, i32) {
    %c0_i32 = arith.constant 0 : i32
    %c0_i32_0 = arith.constant 0 : i32
    return %arg0, %c0_i32 : i32, i32
  }
  func.func @transform_1(%arg0: i32) -> (i32, i32) {
    %c0_i32 = arith.constant 0 : i32
    %c0_i32_0 = arith.constant 0 : i32
    return %arg0, %c0_i32 : i32, i32
  }
  func.func @transform_2(%arg0: i32) -> (i32, i32) {
    %c0_i32 = arith.constant 0 : i32
    %c0_i32_0 = arith.constant 0 : i32
    return %arg0, %c0_i32 : i32, i32
  }
  func.func @transform_3(%arg0: i32) -> (i32, i32) {
    %c0_i32 = arith.constant 0 : i32
    %c0_i32_0 = arith.constant 0 : i32
    return %arg0, %c0_i32 : i32, i32
  }
  func.func @transform_4(%arg0: i32) -> (i32, i32) {
    %c0_i32 = arith.constant 0 : i32
    %c0_i32_0 = arith.constant 0 : i32
    return %arg0, %c0_i32 : i32, i32
  }
  func.func @transform_5(%arg0: i32) -> (i32, i32) {
    %c0_i32 = arith.constant 0 : i32
    %c0_i32_0 = arith.constant 0 : i32
    return %arg0, %c0_i32 : i32, i32
  }
}

</mosaic_0001>

<bundles_post_ra>
// kernel: _postprocess_device.1
= control target key start
LH: loop header
LB: loop body
LE: loop exit
PB: predicated region body
PF: predicated region fallthrough
CT: control target
= control target key end

     0   :  { %s2083_s18 = smov 0   ;;  %s3436_s0 = inlined_call_operand.vmem [shape: f32[512,8], index: 0, kind: input, shape index: {}]   ;;  %s3437_s1 = inlined_call_operand.vmem [shape: f32[512,32], index: 1, kind: input, shape index: {}]   ;;  %s3438_s2 = inlined_call_operand.vmem [shape: f32[512,4], index: 2, kind: input, shape index: {}]   ;;  %s3439_s3 = inlined_call_operand.vmem [shape: f32[512,2], index: 3, kind: input, shape index: {}]   ;;  %s3440_s4 = inlined_call_operand.vmem [shape: f32[512,8], index: 4, kind: output, shape index: {0}]   ;;  %s3441_s5 = inlined_call_operand.vmem [shape: f32[512,32], index: 5, kind: output, shape index: {1}]  }
   0x1 LB: > { %s1876_s19 = sadd.s32 4294967295, %s2042_s18   ;;  %p1880_p0 = scmp.ge.s32.totalorder %s2042_s18, 1  ;;  %s2042_s18 = sphi %s2083_s18, %s16_s18  }
   0x2   : > { %p224_p1 = scmp.lt.s32.totalorder %s2042_s18, 5 }
   0x4   : > { %p225_p2 = pnand %p1880_p0, %p224_p1 }
   0x6   : > { %228 = sbr.rel (%p225_p2) target bundleno = 807 (0x327), region = 36 }
   0xd   : > { %s1881_s20 = sshll.u32 %s1876_s19, 4  ;;  %vm324_vm0 = vcmask 64512   ;;  %s2044_s28 = smov 2   ;;  %v2045_v35 = vmov 2   ;;  %vm1329_vm4 = vcmask 244736   ;;  %vm1458_vm5 = vcmask 15360  }
   0xe   : > { %p273_p3 = scmp.lt.s32.totalorder %s1881_s20, 63  ;;  %1928 = vset.pattern.permute.xlu0 %v2045_v35  ;;  %1929 = vset.pattern.permute.xlu1 %v2045_v35  ;;  %s2046_s29 = smov 126   ;;  %vm1733_vm7 = vcmask 261120  }
   0xf   : > { %s2051_s11 = smov 30   ;;  %s2052_s12 = smov 98  }
  0x10   : > { %s3515_s20 = smov (!%p273_p3, %s1881_s20), 63 }
  0x11   : > { %s2091_s21 = sshll.u32 %s3515_s20, 3 }
  0x12   : > { %s2097_s24 = scalar_lea.vmem %s3436_s0, %s2091_s21  ;;  %s2183_s27 = scalar_lea.vmem %s3438_s2, %s2091_s21 }
  0x13   : > { %v2100_v0 = vld [vmem:[%s2097_s24 + $0x10] sm:$0xff]  ;;  %v2103_v1 = vld [vmem:[%s2097_s24 + $0x18] sm:$0xff]  ;;  %v2106_v2 = vld [vmem:[%s2097_s24] sm:$0xff]  ;;  %s2560_s7 = scalar_lea.vmem %s3437_s1, %s2091_s21  ;;  %s2570_s10 = scalar_lea.vmem %s3440_s4, %s2091_s21 }
  0x14   : > { %v331_v3 = vsel %vm324_vm0, %v2100_v0, -inf  ;;  %v325_v4 = vsel %vm324_vm0, %v2106_v2, -inf  ;;  %v2113_v5 = vld [vmem:[%s2097_s24 + $0x8] sm:$0xff]  ;;  %v334_v6 = vsel %vm324_vm0, %v2103_v1, -inf  ;;  %v2123_v9 = vld [vmem:[%s2097_s24 + $0x20] sm:$0xff]  ;;  %v2130_v12 = vld [vmem:[%s2097_s24 + $0x38] sm:$0xff]  ;;  %s3081_s15 = scalar_lea.vmem %s3439_s3, %s2091_s21  ;;  %s3346_s19 = scalar_lea.vmem %s3441_s5, %s2091_s21 }
  0x15   : > { %332 = vmax.xlane.f32.xlu1 %v331_v3  ;;  %326 = vmax.xlane.f32.xlu0 %v325_v4  ;;  %v328_v7 = vsel %vm324_vm0, %v2113_v5, -inf  ;;  %v2120_v8 = vld [vmem:[%s2097_s24 + $0x28] sm:$0xff]  ;;  %v337_v11 = vsel %vm324_vm0, %v2123_v9, -inf  ;;  %v2133_v13 = vld [vmem:[%s2097_s24 + $0x30] sm:$0xff]  ;;  %v346_v14 = vsel %vm324_vm0, %v2130_v12, -inf  ;;  %v2143_v17 = vld [vmem:[%s2097_s24 + $0x40] sm:$0xff] }
  0x16   : > { %v340_v10 = vsel %vm324_vm0, %v2120_v8, -inf  ;;  %v343_v15 = vsel %vm324_vm0, %v2133_v13, -inf  ;;  %v2140_v16 = vld [vmem:[%s2097_s24 + $0x48] sm:$0xff]  ;;  %v349_v19 = vsel %vm324_vm0, %v2143_v17, -inf  ;;  %v2150_v20 = vld [vmem:[%s2097_s24 + $0x58] sm:$0xff]  ;;  %v2153_v21 = vld [vmem:[%s2097_s24 + $0x50] sm:$0xff] }
  0x17   : > { %v352_v18 = vsel %vm324_vm0, %v2140_v16, -inf  ;;  %v358_v22 = vsel %vm324_vm0, %v2150_v20, -inf  ;;  %v355_v23 = vsel %vm324_vm0, %v2153_v21, -inf  ;;  %v2160_v24 = vld [vmem:[%s2097_s24 + $0x68] sm:$0xff]  ;;  %v2163_v25 = vld [vmem:[%s2097_s24 + $0x60] sm:$0xff]  ;;  %v2170_v28 = vld [vmem:[%s2097_s24 + $0x78] sm:$0xff] }
  0x18   : > { %v364_v26 = vsel %vm324_vm0, %v2160_v24, -inf  ;;  %v361_v27 = vsel %vm324_vm0, %v2163_v25, -inf  ;;  %v2173_v29 = vld [vmem:[%s2097_s24 + $0x70] sm:$0xff]  ;;  %v370_v30 = vsel %vm324_vm0, %v2170_v28, -inf  ;;  %v2186_v32 = vld [vmem:[%s2183_s27 + $0x8] sm:$0xff]  ;;  %v2194_v34 = vld [vmem:[%s2183_s27] sm:$0xff] }
  0x19   : > { %335 = vmax.xlane.f32.xlu1 %v334_v6  ;;  %329 = vmax.xlane.f32.xlu0 %v328_v7  ;;  %v367_v31 = vsel %vm324_vm0, %v2173_v29, -inf  ;;  %v2191_v33 = vld [vmem:[%s2183_s27 + $0x10] sm:$0xff]  ;;  %v2201_v36 = vld [vmem:[%s2183_s27 + $0x18] sm:$0xff]  ;;  %v2204_v37 = vld [vmem:[%s2183_s27 + $0x20] sm:$0xff] }
  0x1a   : > { %3467 = vst [vmem:[#allocation2_spill] sm:$0xff] %v2201_v36  ;;  %3468 = vst [vmem:[#allocation3_spill] sm:$0xff] %v2204_v37  ;;  %v2211_v38 = vld [vmem:[%s2183_s27 + $0x28] sm:$0xff]  ;;  %v2214_v39 = vld [vmem:[%s2183_s27 + $0x30] sm:$0xff] }
  0x1b   : > { %3469 = vst [vmem:[#allocation4_spill] sm:$0xff] %v2211_v38  ;;  %3470 = vst [vmem:[#allocation5_spill] sm:$0xff] %v2214_v39  ;;  %v2221_v40 = vld [vmem:[%s2183_s27 + $0x38] sm:$0xff]  ;;  %v2224_v41 = vld [vmem:[%s2183_s27 + $0x40] sm:$0xff] }
  0x1c   : > { %3471 = vst [vmem:[#allocation6_spill] sm:$0xff] %v2221_v40  ;;  %3472 = vst [vmem:[#allocation7_spill] sm:$0xff] %v2224_v41  ;;  %v2231_v42 = vld [vmem:[%s2183_s27 + $0x48] sm:$0xff]  ;;  %v2234_v43 = vld [vmem:[%s2183_s27 + $0x50] sm:$0xff] }
  0x1d   : > { %341 = vmax.xlane.f32.xlu1 %v340_v10  ;;  %338 = vmax.xlane.f32.xlu0 %v337_v11  ;;  %3473 = vst [vmem:[#allocation8_spill] sm:$0xff] %v2231_v42  ;;  %3474 = vst [vmem:[#allocation9_spill] sm:$0xff] %v2234_v43  ;;  %v2239_v44 = vld [vmem:[%s2183_s27 + $0x58] sm:$0xff]  ;;  %v2244_v45 = vld [vmem:[%s2183_s27 + $0x60] sm:$0xff] }
  0x1e   : > { %3475 = vst [vmem:[#allocation10_spill] sm:$0xff] %v2239_v44  ;;  %v2249_v46 = vld [vmem:[%s2183_s27 + $0x68] sm:$0xff]  ;;  %v2254_v47 = vld [vmem:[%s2183_s27 + $0x70] sm:$0xff]  ;;  %v2259_v48 = vld [vmem:[%s2183_s27 + $0x78] sm:$0xff] }
  0x21   : > { %347 = vmax.xlane.f32.xlu1 %v346_v14  ;;  %344 = vmax.xlane.f32.xlu0 %v343_v15 }
  0x25   : > { %353 = vmax.xlane.f32.xlu1 %v352_v18  ;;  %350 = vmax.xlane.f32.xlu0 %v349_v19 }
  0x29   : > { %359 = vmax.xlane.f32.xlu1 %v358_v22  ;;  %356 = vmax.xlane.f32.xlu0 %v355_v23 }
  0x2d   : > { %365 = vmax.xlane.f32.xlu1 %v364_v26  ;;  %362 = vmax.xlane.f32.xlu0 %v361_v27 }
  0x31   : > { %371 = vmax.xlane.f32.xlu1 %v370_v30  ;;  %368 = vmax.xlane.f32.xlu0 %v367_v31 }
  0x42   : > { %551 = vrot.lane.b32.xlu1 %v2186_v32, %s2044_s28 }
  0x46   : > { %553 = vrot.lane.b32.xlu1 %v2191_v33, %s2044_s28 }
  0x47   : > { %549 = vrot.lane.b32.xlu0 %v2194_v34, %s2044_s28 }
  0x4a   : > { %555 = vrot.lane.b32.xlu1 %v2201_v36, %s2044_s28 }
  0x4b   : > { %557 = vrot.lane.b32.xlu0 %v2204_v37, %s2044_s28 }
  0x4e   : > { %559 = vrot.lane.b32.xlu1 %v2211_v38, %s2044_s28 }
  0x4f   : > { %561 = vrot.lane.b32.xlu0 %v2214_v39, %s2044_s28 }
  0x52   : > { %563 = vrot.lane.b32.xlu1 %v2221_v40, %s2044_s28 }
  0x53   : > { %565 = vrot.lane.b32.xlu0 %v2224_v41, %s2044_s28 }
  0x56   : > { %567 = vrot.lane.b32.xlu1 %v2231_v42, %s2044_s28 }
  0x57   : > { %569 = vrot.lane.b32.xlu0 %v2234_v43, %s2044_s28 }
  0x5a   : > { %571 = vrot.lane.b32.xlu1 %v2239_v44, %s2044_s28 }
  0x5b   : > { %573 = vrot.lane.b32.xlu0 %v2244_v45, %s2044_s28 }
  0x5e   : > { %575 = vrot.lane.b32.xlu1 %v2249_v46, %s2044_s28 }
  0x5f   : > { %577 = vrot.lane.b32.xlu0 %v2254_v47, %s2044_s28 }
  0x62   : > { %579 = vrot.lane.b32.xlu1 %v2259_v48, %s2044_s28 }
  0xa2   : > { %v2265_v49 = vpop.xlane.xlu1 %332  ;;  %v2267_v50 = vpop.xlane.xlu0 %326 }
  0xa6   : > { %v2269_v51 = vpop.xlane.xlu1 %335  ;;  %v2271_v52 = vpop.xlane.xlu0 %329 }
  0xaa   : > { %v2273_v53 = vpop.xlane.xlu1 %341  ;;  %v2275_v54 = vpop.xlane.xlu0 %338 }
  0xae   : > { %v2277_v55 = vpop.xlane.xlu1 %347  ;;  %v2279_v56 = vpop.xlane.xlu0 %344 }
  0xb2   : > { %v2281_v57 = vpop.xlane.xlu1 %353  ;;  %v2283_v58 = vpop.xlane.xlu0 %350 }
  0xb6   : > { %v2285_v59 = vpop.xlane.xlu1 %359  ;;  %v2287_v60 = vpop.xlane.xlu0 %356 }
  0xba   : > { %v2289_v61 = vpop.xlane.xlu1 %365  ;;  %v2291_v62 = vpop.xlane.xlu0 %362 }
  0xbe   : > { %v2293_v63 = vpop.xlane.xlu1 %371  ;;  %v2295_v3 = vpop.xlane.xlu0 %368 }
  0xc2   : > { %v552_v4 = vpop.permute.xlu1 %551  ;;  %v550_v6 = vpop.permute.xlu0 %549 }
  0xc3   : > { %v598_v7 = vsub.f32 %v2186_v32, %v552_v4  ;;  %v597_v10 = vsub.f32 %v2194_v34, %v550_v6 }
  0xc5   : > { %v2299_v11 = vadd.f32 1.0, %v598_v7  ;;  %v2301_v14 = vadd.f32 1.0, %v597_v10 }
  0xc6   : > { %v554_v15 = vpop.permute.xlu1 %553  ;;  %v558_v18 = vpop.permute.xlu0 %557 }
  0xc7   : > { %v599_v19 = vsub.f32 %v2191_v33, %v554_v15  ;;  %792 = vperm.xlu1 %1929, %v2299_v11   ;;  %v601_v22 = vsub.f32 %v2204_v37, %v558_v18  ;;  %787 = vperm.xlu0 %1928, %v2301_v14  }
  0xc9   : > { %v2307_v23 = vadd.f32 1.0, %v599_v19  ;;  %v2310_v31 = vadd.f32 1.0, %v601_v22 }
  0xca   : > { %v556_v26 = vpop.permute.xlu1 %555  ;;  %v562_v27 = vpop.permute.xlu0 %561 }
  0xcb   : > { %v600_v30 = vsub.f32 %v2201_v36, %v556_v26  ;;  %797 = vperm.xlu1 %1929, %v2307_v23   ;;  %v603_v35 = vsub.f32 %v2214_v39, %v562_v27 }
  0xcd   : > { %v2314_v4 = vadd.f32 1.0, %v600_v30  ;;  %v2317_v15 = vadd.f32 1.0, %v603_v35 }
  0xce   : > { %v560_v6 = vpop.permute.xlu1 %559  ;;  %v566_v7 = vpop.permute.xlu0 %565 }
  0xcf   : > { %v602_v10 = vsub.f32 %v2211_v38, %v560_v6  ;;  %802 = vperm.xlu0 %1928, %v2314_v4   ;;  %807 = vperm.xlu1 %1929, %v2310_v31   ;;  %v605_v18 = vsub.f32 %v2224_v41, %v566_v7  ;;  %v629_v6 = vmul.f32 0.5, %v2301_v14  ;;  %v630_v7 = vmul.f32 0.5, %v2299_v11 }
  0xd0   : > { %v633_v38 = vmul.f32 0.5, %v2310_v31 }
  0xd1   : > { %v2322_v19 = vadd.f32 1.0, %v602_v10  ;;  %v2325_v27 = vadd.f32 1.0, %v605_v18 }
  0xd2   : > { %v564_v22 = vpop.permute.xlu1 %563  ;;  %v570_v18 = vpop.permute.xlu0 %569 }
  0xd3   : > { %v604_v26 = vsub.f32 %v2221_v40, %v564_v22  ;;  %812 = vperm.xlu0 %1928, %v2322_v19   ;;  %817 = vperm.xlu1 %1929, %v2317_v15   ;;  %v631_v22 = vmul.f32 0.5, %v2307_v23  ;;  %v634_v36 = vmul.f32 0.5, %v2322_v19 }
  0xd5   : > { %v2329_v30 = vadd.f32 1.0, %v604_v26  ;;  %v632_v26 = vmul.f32 0.5, %v2314_v4 }
  0xd6   : > { %v568_v35 = vpop.permute.xlu1 %567 }
  0xd7   : > { %822 = vperm.xlu0 %1928, %v2329_v30   ;;  %827 = vperm.xlu1 %1929, %v2325_v27   ;;  %v606_v40 = vsub.f32 %v2231_v42, %v568_v35  ;;  %v636_v35 = vmul.f32 0.5, %v2329_v30 }
  0xd9   : > { %v2347_v39 = vadd.f32 1.0, %v606_v40 }
  0xda   : > { %v572_v10 = vpop.permute.xlu1 %571 }
  0xdb   : > { %661 = vrot.lane.b32.xlu0 %v629_v6, %s2046_s29  ;;  %663 = vrot.lane.b32.xlu1 %v630_v7, %s2046_s29  ;;  %v607_v6 = vsub.f32 %v2234_v43, %v570_v18  ;;  %v574_v7 = vpop.permute.xlu0 %573 }
  0xdc   : > { %v609_v37 = vsub.f32 %v2244_v45, %v574_v7 }
  0xdd   : > { %v2352_v42 = vadd.f32 1.0, %v607_v6 }
  0xde   : > { %v576_v41 = vpop.permute.xlu1 %575  ;;  %v2362_v43 = vadd.f32 1.0, %v609_v37 }
  0xdf   : > { %665 = vrot.lane.b32.xlu0 %v631_v22, %s2046_s29  ;;  %667 = vrot.lane.b32.xlu1 %v632_v26, %s2046_s29  ;;  %v608_v22 = vsub.f32 %v2239_v44, %v572_v10  ;;  %v635_v26 = vmul.f32 0.5, %v2317_v15  ;;  %v578_v10 = vpop.permute.xlu0 %577  ;;  %v637_v44 = vmul.f32 0.5, %v2325_v27  ;;  %v639_v6 = vmul.f32 0.5, %v2352_v42 }
  0xe1   : > { %v2357_v18 = vadd.f32 1.0, %v608_v22 }
  0xe2   : > { %v580_v40 = vpop.permute.xlu1 %579 }
  0xe3   : > { %669 = vrot.lane.b32.xlu0 %v633_v38, %s2046_s29  ;;  %671 = vrot.lane.b32.xlu1 %v634_v36, %s2046_s29  ;;  %v638_v36 = vmul.f32 0.5, %v2347_v39  ;;  %v610_v38 = vsub.f32 %v2249_v46, %v576_v41  ;;  %v640_v22 = vmul.f32 0.5, %v2357_v18  ;;  %v611_v41 = vsub.f32 %v2254_v47, %v578_v10 }
  0xe4   : > { %v373_v10 = vsub.f32 %v2106_v2, %v2267_v50  ;;  %v378_v2 = vsub.f32 %v2120_v8, %v2273_v53  ;;  %v382_v8 = vsub.f32 %v2140_v16, %v2281_v57 }
  0xe5   : > { %v2367_v7 = vadd.f32 1.0, %v610_v38 }
  0xe7   : > { %673 = vrot.lane.b32.xlu0 %v635_v26, %s2046_s29  ;;  %675 = vrot.lane.b32.xlu1 %v636_v35, %s2046_s29  ;;  %v612_v26 = vsub.f32 %v2259_v48, %v580_v40  ;;  %v2376_v35 = vadd.f32 1.0, %v611_v41  ;;  %v376_v41 = vsub.f32 %v2103_v1, %v2269_v51  ;;  %v380_v1 = vsub.f32 %v2130_v12, %v2277_v55 }
  0xe8   : > { %v407_v12 = vmul.f32 1.442695, %v382_v8  ;;  %v384_v55 = vsub.f32 %v2150_v20, %v2285_v59  ;;  %v386_v20 = vsub.f32 %v2160_v24, %v2289_v61  ;;  %v388_v24 = vsub.f32 %v2170_v28, %v2293_v63 }
  0xe9   : > { %v2374_v37 = vadd.f32 1.0, %v612_v26  ;;  %v643_v40 = vmul.f32 0.5, %v2376_v35  ;;  %v389_v26 = vmul.f32 1.442695, %v373_v10  ;;  %v403_v51 = vmul.f32 1.442695, %v380_v1 }
  0xeb   : > { %679 = vrot.lane.b32.xlu1 %v638_v36, %s2046_s29  ;;  %677 = vrot.lane.b32.xlu0 %v637_v44, %s2046_s29  ;;  %v642_v36 = vmul.f32 0.5, %v2367_v7  ;;  %v641_v44 = vmul.f32 0.5, %v2362_v43  ;;  %v644_v38 = vmul.f32 0.5, %v2374_v37  ;;  %1940 = vpow2.f32 %v389_v26 }
  0xef   : > { %683 = vrot.lane.b32.xlu1 %v640_v22, %s2046_s29  ;;  %681 = vrot.lane.b32.xlu0 %v639_v6, %s2046_s29  ;;  %v374_v6 = vsub.f32 %v2113_v5, %v2271_v52  ;;  %v375_v22 = vsub.f32 %v2100_v0, %v2265_v49  ;;  %v379_v0 = vsub.f32 %v2133_v13, %v2279_v56  ;;  %v399_v49 = vmul.f32 1.442695, %v378_v2 }
  0xf1   : > { %v401_v50 = vmul.f32 1.442695, %v379_v0 }
  0xf3   : > { %687 = vrot.lane.b32.xlu1 %v642_v36, %s2046_s29  ;;  %685 = vrot.lane.b32.xlu0 %v641_v44, %s2046_s29  ;;  %v391_v36 = vmul.f32 1.442695, %v374_v6  ;;  %v393_v44 = vmul.f32 1.442695, %v375_v22 }
  0xf5   : > { %1942 = vpow2.f32 %v391_v36  ;;  %v2409_v52 = vpop.eup %1940 }
  0xf6   : > { %1944 = vpow2.f32 %v393_v44 }
  0xf7   : > { %691 = vrot.lane.b32.xlu1 %v644_v38, %s2046_s29  ;;  %689 = vrot.lane.b32.xlu0 %v643_v40, %s2046_s29  ;;  %v377_v38 = vsub.f32 %v2123_v9, %v2275_v54  ;;  %v395_v40 = vmul.f32 1.442695, %v376_v41  ;;  %v381_v9 = vsub.f32 %v2143_v17, %v2283_v58  ;;  %v383_v54 = vsub.f32 %v2153_v21, %v2287_v60 }
  0xf8   : > { %v421_v17 = vsel %vm324_vm0, %v2409_v52, 0.0  ;;  %v385_v21 = vsub.f32 %v2163_v25, %v2291_v62  ;;  %v411_v60 = vmul.f32 1.442695, %v384_v55  ;;  %v387_v25 = vsub.f32 %v2173_v29, %v2295_v3 }
  0xf9   : > { %v397_v5 = vmul.f32 1.442695, %v377_v38  ;;  %1946 = vpow2.f32 %v395_v40  ;;  %v405_v13 = vmul.f32 1.442695, %v381_v9  ;;  %v409_v58 = vmul.f32 1.442695, %v383_v54 }
  0xfa   : > { %v413_v26 = vmul.f32 1.442695, %v385_v21  ;;  %v415_v62 = vmul.f32 1.442695, %v386_v20  ;;  %v417_v38 = vmul.f32 1.442695, %v387_v25 }
  0xfb   : > { %837 = vperm.xlu1 %1929, %v2352_v42   ;;  %832 = vperm.xlu0 %1928, %v2347_v39   ;;  %1948 = vpow2.f32 %v397_v5  ;;  %v419_v29 = vmul.f32 1.442695, %v388_v24  ;;  %v2047_v21 = vmov 3   ;;  %v3478_v24 = vld [vmem:[#allocation7_spill] sm:$0xff] }
  0xfc   : > { %1950 = vpow2.f32 %v399_v49 }
  0xfd   : > { %1952 = vpow2.f32 %v401_v50 }
  0xfe   : > { %1954 = vpow2.f32 %v403_v51 }
  0xff   : > { %842 = vperm.xlu0 %1928, %v2357_v18   ;;  %v2411_v53 = vpop.eup %1942  ;;  %1956 = vpow2.f32 %v405_v13 }
 0x100   : > { %v2419_v56 = vpop.eup %1944  ;;  %v424_v16 = vsel %vm324_vm0, %v2411_v53, 0.0  ;;  %1958 = vpow2.f32 %v407_v12 }
 0x101   : > { %v427_v59 = vsel %vm324_vm0, %v2419_v56, 0.0  ;;  %1960 = vpow2.f32 %v409_v58 }
 0x102   : > { %1962 = vpow2.f32 %v411_v60 }
 0x103   : > { %v2423_v57 = vpop.eup %1946  ;;  %1964 = vpow2.f32 %v413_v26 }
 0x104   : > { %v430_v6 = vsel %vm324_vm0, %v2423_v57, 0.0  ;;  %1966 = vpow2.f32 %v415_v62 }
 0x105   : > { %v2431_v10 = vpop.eup %1948  ;;  %1968 = vpow2.f32 %v417_v38  ;;  %v3479_v38 = vld [vmem:[#allocation9_spill] sm:$0xff] }
 0x106   : > { %v2435_v22 = vpop.eup %1950  ;;  %v433_v61 = vsel %vm324_vm0, %v2431_v10, 0.0  ;;  %1970 = vpow2.f32 %v419_v29 }
 0x107   : > { %v2443_v41 = vpop.eup %1952  ;;  %v436_v36 = vsel %vm324_vm0, %v2435_v22, 0.0 }
 0x108   : > { %v2447_v44 = vpop.eup %1954  ;;  %v439_v3 = vsel %vm324_vm0, %v2443_v41, 0.0 }
 0x109   : > { %v2451_v28 = vpop.eup %1956  ;;  %v442_v63 = vsel %vm324_vm0, %v2447_v44, 0.0 }
 0x10a   : > { %v2455_v40 = vpop.eup %1958  ;;  %v445_v2 = vsel %vm324_vm0, %v2451_v28, 0.0 }
 0x10b   : > { %v2459_v5 = vpop.eup %1960  ;;  %v448_v0 = vsel %vm324_vm0, %v2455_v40, 0.0 }
 0x10c   : > { %v2463_v49 = vpop.eup %1962  ;;  %v451_v1 = vsel %vm324_vm0, %v2459_v5, 0.0 }
 0x10d   : > { %v2467_v50 = vpop.eup %1964  ;;  %v454_v9 = vsel %vm324_vm0, %v2463_v49, 0.0 }
 0x10e   : > { %v2471_v51 = vpop.eup %1966  ;;  %v457_v8 = vsel %vm324_vm0, %v2467_v50, 0.0 }
 0x10f   : > { %v2475_v13 = vpop.eup %1968  ;;  %v460_v54 = vsel %vm324_vm0, %v2471_v51, 0.0 }
 0x110   : > { %v2479_v12 = vpop.eup %1970  ;;  %v463_v55 = vsel %vm324_vm0, %v2475_v13, 0.0 }
 0x11e   : > { %422 = vadd.xlane.f32.xlu0 %v421_v17  ;;  %v466_v17 = vsel %vm324_vm0, %v2479_v12, 0.0 }
 0x11f   : > { %425 = vadd.xlane.f32.xlu1 %v424_v16 }
 0x122   : > { %428 = vadd.xlane.f32.xlu0 %v427_v59 }
 0x123   : > { %431 = vadd.xlane.f32.xlu1 %v430_v6 }
 0x126   : > { %434 = vadd.xlane.f32.xlu0 %v433_v61 }
 0x127   : > { %437 = vadd.xlane.f32.xlu1 %v436_v36 }
 0x12a   : > { %440 = vadd.xlane.f32.xlu0 %v439_v3 }
 0x12b   : > { %443 = vadd.xlane.f32.xlu1 %v442_v63 }
 0x12e   : > { %446 = vadd.xlane.f32.xlu0 %v445_v2 }
 0x12f   : > { %449 = vadd.xlane.f32.xlu1 %v448_v0 }
 0x132   : > { %452 = vadd.xlane.f32.xlu0 %v451_v1  ;;  %v3480_v1 = vld [vmem:[#allocation2_spill] sm:$0xff] }
 0x133   : > { %455 = vadd.xlane.f32.xlu1 %v454_v9 }
 0x136   : > { %458 = vadd.xlane.f32.xlu0 %v457_v8 }
 0x137   : > { %461 = vadd.xlane.f32.xlu1 %v460_v54  ;;  %v3481_v54 = vld [vmem:[#allocation4_spill] sm:$0xff] }
 0x13a   : > { %464 = vadd.xlane.f32.xlu0 %v463_v55 }
 0x13b   : > { %467 = vadd.xlane.f32.xlu1 %v466_v17  ;;  %v3482_v17 = vld [vmem:[#allocation6_spill] sm:$0xff] }
 0x146   : > { %v2485_v16 = vpop.permute.xlu0 %787  ;;  %v2494_v60 = vpop.permute.xlu1 %792 }
 0x14a   : > { %v2500_v59 = vpop.permute.xlu1 %797 }
 0x14c   : > { %847 = vperm.xlu1 %1929, %v2362_v43  }
 0x14e   : > { %v2490_v58 = vpop.permute.xlu0 %802 }
 0x150   : > { %857 = vperm.xlu1 %1929, %v2376_v35   ;;  %852 = vperm.xlu0 %1928, %v2367_v7  }
 0x152   : > { %v2496_v20 = vpop.permute.xlu0 %812 }
 0x154   : > { %1930 = vset.pattern.permute.xlu1 %v2047_v21  ;;  %862 = vperm.xlu0 %1928, %v2374_v37  }
 0x155   : > { %866 = vperm.xlu1 %1930, %v2301_v14   ;;  %v2508_v14 = vpop.permute.xlu1 %807 }
 0x156   : > { %v2504_v6 = vpop.permute.xlu0 %822 }
 0x158   : > { %1931 = vset.pattern.permute.xlu0 %v2047_v21 }
 0x159   : > { %874 = vperm.xlu1 %1930, %v2307_v23   ;;  %870 = vperm.xlu0 %1931, %v2299_v11   ;;  %v2512_v11 = vpop.permute.xlu1 %817 }
 0x15a   : > { %v662_v26 = vpop.permute.xlu0 %661 }
 0x15d   : > { %878 = vperm.xlu1 %1930, %v2314_v4   ;;  %882 = vperm.xlu0 %1931, %v2310_v31   ;;  %v2518_v31 = vpop.permute.xlu1 %827 }
 0x15e   : > { %v666_v23 = vpop.permute.xlu0 %665 }
 0x161   : > { %886 = vperm.xlu1 %1930, %v2322_v19   ;;  %890 = vperm.xlu0 %1931, %v2317_v15   ;;  %v709_v15 = vadd.f32 %v662_v26, %v2194_v34  ;;  %v664_v19 = vpop.permute.xlu1 %663  ;;  %v3483_v26 = vld [vmem:[#allocation8_spill] sm:$0xff] }
 0x162   : > { %v670_v4 = vpop.permute.xlu0 %669 }
 0x165   : > { %894 = vperm.xlu1 %1930, %v2329_v30   ;;  %898 = vperm.xlu0 %1931, %v2325_v27   ;;  %v710_v27 = vadd.f32 %v664_v19, %v2186_v32  ;;  %v711_v30 = vadd.f32 %v666_v23, %v2191_v33  ;;  %v741_v19 = vlaneseq }
 0x169   : > { %902 = vperm.xlu1 %1930, %v2347_v39   ;;  %906 = vperm.xlu0 %1931, %v2352_v42   ;;  %v2048_v39 = vmov 0   ;;  %v674_v42 = vpop.permute.xlu0 %673 }
 0x16d   : > { %910 = vperm.xlu1 %1930, %v2357_v18   ;;  %914 = vperm.xlu0 %1931, %v2362_v43   ;;  %v3451_v43 = vmov 1   ;;  %v678_v34 = vpop.permute.xlu0 %677  ;;  %v3476_v18 = vld [vmem:[#allocation3_spill] sm:$0xff] }
 0x16e   : > { %v717_v61 = vadd.f32 %v678_v34, %v3478_v24  ;;  %v2544_v34 = vand.u32 127, %v741_v19 }
 0x171   : > { %918 = vperm.xlu1 %1930, %v2367_v7   ;;  %922 = vperm.xlu0 %1931, %v2376_v35   ;;  %v713_v7 = vadd.f32 %v670_v4, %v3476_v18  ;;  %v3477_v35 = vld [vmem:[#allocation5_spill] sm:$0xff]  ;;  %v682_v62 = vpop.permute.xlu0 %681 }
 0x172   : > { %v715_v25 = vadd.f32 %v674_v42, %v3477_v35  ;;  %v719_v29 = vadd.f32 %v682_v62, %v3479_v38  ;;  %v3484_v42 = vld [vmem:[#allocation10_spill] sm:$0xff] }
 0x173   : > { %v751_v38 = vld [vmem:[%s2560_s7] sm:$0xff] }
 0x175   : > { %926 = vperm.xlu1 %1930, %v2374_v37   ;;  %1932 = vset.pattern.permute.xlu0 %v2048_v39  ;;  %v668_v37 = vpop.permute.xlu1 %667  ;;  %v686_v36 = vpop.permute.xlu0 %685 }
 0x176   : > { %947 = vperm.xlu0 %1932, %v709_v15   ;;  %v721_v3 = vadd.f32 %v686_v36, %v2244_v45  ;;  %v712_v9 = vadd.f32 %v668_v37, %v3480_v1 }
 0x179   : > { %1933 = vset.pattern.permute.xlu1 %v2048_v39  ;;  %v672_v32 = vpop.permute.xlu1 %671  ;;  %v690_v63 = vpop.permute.xlu0 %689 }
 0x17a   : > { %952 = vperm.xlu1 %1933, %v710_v27   ;;  %1935 = vset.pattern.permute.xlu0 %v3451_v43  ;;  %v723_v0 = vadd.f32 %v690_v63, %v2254_v47  ;;  %v714_v55 = vadd.f32 %v672_v32, %v3481_v54 }
 0x17b   : > { %1030 = vperm.xlu0 %1935, %v710_v27  }
 0x17d   : > { %v676_v33 = vpop.permute.xlu1 %675  ;;  %v2540_v47 = vpop.permute.xlu0 %832 }
 0x17e   : > { %957 = vperm.xlu1 %1933, %v711_v30   ;;  %v716_v21 = vadd.f32 %v676_v33, %v3482_v17 }
 0x17f   : > { %1042 = vperm.xlu0 %1935, %v713_v7  }
 0x181   : > { %v680_v2 = vpop.permute.xlu1 %679  ;;  %v2546_v18 = vpop.permute.xlu0 %842 }
 0x182   : > { %967 = vperm.xlu1 %1933, %v713_v7   ;;  %v718_v23 = vadd.f32 %v680_v2, %v3483_v26  ;;  %v2552_v7 = vand.u32 3, %v2544_v34 }
 0x183   : > { %1050 = vperm.xlu0 %1935, %v715_v25  }
 0x184   : > { %vm748_vm1 = vcmp.eq.s32.totalorder %v2552_v7, 1  ;;  %vm747_vm2 = vcmp.eq.s32.totalorder %v2552_v7, 0  ;;  %vm744_vm6 = vcmp.lt.s32.totalorder %v2552_v7, 2 }
 0x185   : > { %v684_v8 = vpop.permute.xlu1 %683 }
 0x186   : > { %977 = vperm.xlu1 %1933, %v715_v25   ;;  %v720_v27 = vadd.f32 %v684_v8, %v3484_v42  ;;  %v752_v8 = vld [vmem:[%s2560_s7 + $0x8] sm:$0xff]  ;;  %v755_v42 = vld [vmem:[%s2560_s7 + $0x20] sm:$0xff] }
 0x187   : > { %1058 = vperm.xlu0 %1935, %v717_v61  }
 0x189   : > { %v688_v45 = vpop.permute.xlu1 %687 }
 0x18a   : > { %987 = vperm.xlu1 %1933, %v717_v61  }
 0x18b   : > { %1066 = vperm.xlu0 %1935, %v719_v29  }
 0x18d   : > { %v692_v4 = vpop.permute.xlu1 %691 }
 0x18e   : > { %997 = vperm.xlu1 %1933, %v719_v29   ;;  %v724_v25 = vadd.f32 %v692_v4, %v2259_v48  ;;  %v754_v4 = vld [vmem:[%s2560_s7 + $0x18] sm:$0xff] }
 0x18f   : > { %1074 = vperm.xlu0 %1935, %v721_v3  }
 0x192   : > { %1007 = vperm.xlu1 %1933, %v721_v3  }
 0x193   : > { %1082 = vperm.xlu0 %1935, %v723_v0  }
 0x196   : > { %1017 = vperm.xlu1 %1933, %v723_v0   ;;  %v753_v0 = vld [vmem:[%s2560_s7 + $0x10] sm:$0xff] }
 0x197   : > { %1936 = vset.pattern.permute.xlu0 %v2048_v39 }
 0x198   : > { %962 = vperm.xlu0 %1936, %v712_v9  }
 0x19a   : > { %1934 = vset.pattern.permute.xlu1 %v3451_v43 }
 0x19b   : > { %1026 = vperm.xlu1 %1934, %v709_v15   ;;  %v2548_v15 = vpop.permute.xlu1 %837 }
 0x19c   : > { %972 = vperm.xlu0 %1936, %v714_v55  }
 0x19f   : > { %1034 = vperm.xlu1 %1934, %v711_v30   ;;  %v722_v30 = vadd.f32 %v688_v45, %v2249_v46  ;;  %v2050_v46 = vmov 0.2  }
 0x1a0   : > { %982 = vperm.xlu0 %1936, %v716_v21   ;;  %v749_v48 = vsel %vm748_vm1, 0.1, %v2050_v46 }
 0x1a1   : > { %v2563_v36 = vsel %vm747_vm2, 0.1, %v749_v48 }
 0x1a2   : > { %v2574_v2 = vmul.f32 %v751_v38, %v2563_v36  ;;  %v2609_v46 = vmul.f32 %v755_v42, %v2563_v36 }
 0x1a3   : > { %1038 = vperm.xlu1 %1934, %v712_v9  }
 0x1a4   : > { %992 = vperm.xlu0 %1936, %v718_v23   ;;  %v1137_v17 = vmin.f32 %v2574_v2, 4.1351666 }
 0x1a7   : > { %1046 = vperm.xlu1 %1934, %v714_v55  }
 0x1a8   : > { %1002 = vperm.xlu0 %1936, %v720_v27  }
 0x1ab   : > { %1054 = vperm.xlu1 %1934, %v716_v21   ;;  %v423_v37 = vpop.xlane.xlu0 %422  ;;  %v2589_v21 = vmul.f32 %v752_v8, %v2563_v36 }
 0x1ac   : > { %1972 = vrcp.f32 %v423_v37  ;;  %v426_v35 = vpop.xlane.xlu1 %425  ;;  %1012 = vperm.xlu0 %1936, %v722_v30   ;;  %v1153_v37 = vmul.f32 1.442695, %v1137_v17 }
 0x1ad   : > { %1974 = vrcp.f32 %v426_v35  ;;  %v1138_v35 = vmin.f32 %v2589_v21, 4.1351666 }
 0x1af   : > { %1062 = vperm.xlu1 %1934, %v718_v23   ;;  %v429_v62 = vpop.xlane.xlu0 %428 }
 0x1b0   : > { %1976 = vrcp.f32 %v429_v62  ;;  %v432_v32 = vpop.xlane.xlu1 %431  ;;  %1022 = vperm.xlu0 %1936, %v724_v25  }
 0x1b1   : > { %1978 = vrcp.f32 %v432_v32  ;;  %v2604_v32 = vmul.f32 %v754_v4, %v2563_v36 }
 0x1b3   : > { %1070 = vperm.xlu1 %1934, %v720_v27   ;;  %v435_v24 = vpop.xlane.xlu0 %434 }
 0x1b4   : > { %1980 = vrcp.f32 %v435_v24  ;;  %v438_v61 = vpop.xlane.xlu1 %437  ;;  %v757_v24 = vld [vmem:[%s2560_s7 + $0x30] sm:$0xff] }
 0x1b5   : > { %1982 = vrcp.f32 %v438_v61 }
 0x1b6   : > { %v1973_v29 = vpop.eup %1972 }
 0x1b7   : > { %v1975_v33 = vpop.eup %1974  ;;  %v470_v3 = vmul.f32 %v1973_v29, %v2409_v52  ;;  %1078 = vperm.xlu1 %1934, %v722_v30   ;;  %v441_v63 = vpop.xlane.xlu0 %440  ;;  %v2584_v52 = vmul.f32 %v753_v0, %v2563_v36  ;;  %v1155_v29 = vmul.f32 1.442695, %v1138_v35 }
 0x1b8   : > { %v472_v1 = vmul.f32 %v1975_v33, %v2411_v53  ;;  %1984 = vrcp.f32 %v441_v63  ;;  %v444_v9 = vpop.xlane.xlu1 %443  ;;  %v1140_v63 = vmin.f32 %v2604_v32, 4.1351666 }
 0x1b9   : > { %501 = vst.msk [vmem:[%s2570_s10] sm:$0xff] %vm324_vm0, %v470_v3  ;;  %1986 = vrcp.f32 %v444_v9  ;;  %v1141_v9 = vmin.f32 %v2609_v46, 4.1351666 }
 0x1ba   : > { %v1977_v54 = vpop.eup %1976  ;;  %502 = vst.msk [vmem:[%s2570_s10 + $0x8] sm:$0xff] %vm324_vm0, %v472_v1  ;;  %v758_v1 = vld [vmem:[%s2560_s7 + $0x38] sm:$0xff] }
 0x1bb   : > { %v1979_v55 = vpop.eup %1978  ;;  %v474_v45 = vmul.f32 %v1977_v54, %v2419_v56  ;;  %1086 = vperm.xlu1 %1934, %v724_v25   ;;  %v447_v53 = vpop.xlane.xlu0 %446  ;;  %v1139_v56 = vmin.f32 %v2584_v52, 4.1351666 }
 0x1bc   : > { %v476_v26 = vmul.f32 %v1979_v55, %v2423_v57  ;;  %1988 = vrcp.f32 %v447_v53  ;;  %v450_v23 = vpop.xlane.xlu1 %449  ;;  %v2633_v53 = vmul.f32 %v758_v1, %v2563_v36 }
 0x1bd   : > { %503 = vst.msk [vmem:[%s2570_s10 + $0x10] sm:$0xff] %vm324_vm0, %v474_v45  ;;  %1990 = vrcp.f32 %v450_v23  ;;  %v1159_v23 = vmul.f32 1.442695, %v1140_v63 }
 0x1be   : > { %v1981_v19 = vpop.eup %1980  ;;  %504 = vst.msk [vmem:[%s2570_s10 + $0x18] sm:$0xff] %vm324_vm0, %v476_v26 }
 0x1bf   : > { %v1983_v27 = vpop.eup %1982  ;;  %v478_v30 = vmul.f32 %v1981_v19, %v2431_v10  ;;  %v453_v57 = vpop.xlane.xlu0 %452  ;;  %1937 = vset.pattern.permute.xlu1 %v2048_v39  ;;  %v756_v10 = vld [vmem:[%s2560_s7 + $0x28] sm:$0xff]  ;;  %v1157_v39 = vmul.f32 1.442695, %v1139_v56  ;;  %v1161_v56 = vmul.f32 1.442695, %v1141_v9 }
 0x1c0   : > { %v480_v25 = vmul.f32 %v1983_v27, %v2435_v22  ;;  %1992 = vrcp.f32 %v453_v57  ;;  %v456_v62 = vpop.xlane.xlu1 %455  ;;  %v2619_v0 = vmul.f32 %v756_v10, %v2563_v36  ;;  %v760_v19 = vld [vmem:[%s2560_s7 + $0x48] sm:$0xff]  ;;  %v761_v27 = vld [vmem:[%s2560_s7 + $0x50] sm:$0xff] }
 0x1c1   : > { %505 = vst.msk [vmem:[%s2570_s10 + $0x20] sm:$0xff] %vm324_vm0, %v478_v30  ;;  %1994 = vrcp.f32 %v456_v62  ;;  %v2650_v35 = vmul.f32 %v760_v19, %v2563_v36 }
 0x1c2   : > { %v1985_v48 = vpop.eup %1984  ;;  %506 = vst.msk [vmem:[%s2570_s10 + $0x28] sm:$0xff] %vm324_vm0, %v480_v25  ;;  %1996 = vpow2.f32 %v1153_v37  ;;  %v1142_v4 = vmin.f32 %v2619_v0, 4.1351666  ;;  %v1144_v37 = vmin.f32 %v2633_v53, 4.1351666 }
 0x1c3   : > { %v1987_v22 = vpop.eup %1986  ;;  %v482_v61 = vmul.f32 %v1985_v48, %v2443_v41  ;;  %v459_v38 = vpop.xlane.xlu0 %458  ;;  %v2626_v41 = vmul.f32 %v757_v24, %v2563_v36  ;;  %v2656_v48 = vmul.f32 %v761_v27, %v2563_v36  ;;  %v1146_v1 = vmin.f32 %v2650_v35, 4.1351666 }
 0x1c4   : > { %v484_v33 = vmul.f32 %v1987_v22, %v2447_v44  ;;  %1998 = vrcp.f32 %v459_v38  ;;  %v462_v3 = vpop.xlane.xlu1 %461  ;;  %v759_v44 = vld [vmem:[%s2560_s7 + $0x40] sm:$0xff]  ;;  %v1163_v10 = vmul.f32 1.442695, %v1142_v4  ;;  %v1167_v63 = vmul.f32 1.442695, %v1144_v37  ;;  %v765_v4 = vld [vmem:[%s2560_s7 + $0x70] sm:$0xff] }
 0x1c5   : > { %507 = vst.msk [vmem:[%s2570_s10 + $0x30] sm:$0xff] %vm324_vm0, %v482_v61  ;;  %2000 = vrcp.f32 %v462_v3  ;;  %v2642_v42 = vmul.f32 %v759_v44, %v2563_v36  ;;  %v763_v61 = vld [vmem:[%s2560_s7 + $0x60] sm:$0xff]  ;;  %v1171_v27 = vmul.f32 1.442695, %v1146_v1 }
 0x1c6   : > { %v1989_v8 = vpop.eup %1988  ;;  %508 = vst.msk [vmem:[%s2570_s10 + $0x38] sm:$0xff] %vm324_vm0, %v484_v33  ;;  %2002 = vpow2.f32 %v1157_v39  ;;  %v762_v39 = vld [vmem:[%s2560_s7 + $0x58] sm:$0xff] }
 0x1c7   : > { %v1991_v54 = vpop.eup %1990  ;;  %v486_v55 = vmul.f32 %v1989_v8, %v2451_v28  ;;  %v465_v45 = vpop.xlane.xlu0 %464  ;;  %2004 = vpow2.f32 %v1155_v29  ;;  %v1143_v28 = vmin.f32 %v2626_v41, 4.1351666  ;;  %v1145_v22 = vmin.f32 %v2642_v42, 4.1351666 }
 0x1c8   : > { %v488_v17 = vmul.f32 %v1991_v54, %v2455_v40  ;;  %2006 = vrcp.f32 %v465_v45  ;;  %v468_v26 = vpop.xlane.xlu1 %467  ;;  %v2671_v9 = vmul.f32 %v762_v39, %v2563_v36  ;;  %v2707_v39 = vmul.f32 %v765_v4, %v2563_v36 }
 0x1c9   : > { %509 = vst.msk [vmem:[%s2570_s10 + $0x40] sm:$0xff] %vm324_vm0, %v486_v55  ;;  %2008 = vrcp.f32 %v468_v26  ;;  %v1169_v45 = vmul.f32 1.442695, %v1145_v22 }
 0x1ca   : > { %v1993_v30 = vpop.eup %1992  ;;  %510 = vst.msk [vmem:[%s2570_s10 + $0x48] sm:$0xff] %vm324_vm0, %v488_v17  ;;  %2010 = vpow2.f32 %v1159_v23  ;;  %v764_v17 = vld [vmem:[%s2560_s7 + $0x68] sm:$0xff] }
 0x1cb   : > { %v1995_v40 = vpop.eup %1994  ;;  %v490_v57 = vmul.f32 %v1993_v30, %v2459_v5  ;;  %2012 = vpow2.f32 %v1161_v56  ;;  %v1165_v5 = vmul.f32 1.442695, %v1143_v28  ;;  %v1148_v30 = vmin.f32 %v2671_v9, 4.1351666 }
 0x1cc   : > { %v492_v25 = vmul.f32 %v1995_v40, %v2463_v49  ;;  %v2653_v62 = vpop.permute.xlu1 %847  ;;  %v1997_v24 = vpop.eup %1996  ;;  %v745_v49 = vand.u32 1, %v2544_v34  ;;  %2014 = vpow2.f32 %v1163_v10  ;;  %v1147_v34 = vmin.f32 %v2656_v48, 4.1351666 }
 0x1cd   : > { %511 = vst.msk [vmem:[%s2570_s10 + $0x50] sm:$0xff] %vm324_vm0, %v490_v57  ;;  %2016 = vpow2.f32 %v1165_v5  ;;  %v1185_v23 = vmul.f32 0.5, %v1997_v24  ;;  %v2697_v10 = vmul.f32 %v764_v17, %v2563_v36 }
 0x1ce   : > { %v1999_v38 = vpop.eup %1998  ;;  %512 = vst.msk [vmem:[%s2570_s10 + $0x58] sm:$0xff] %vm324_vm0, %v492_v25  ;;  %vm2685_vm3 = vcmp.eq.s32.totalorder %v745_v49, 0  ;;  %2018 = vpow2.f32 %v1167_v63  ;;  %v1173_v37 = vmul.f32 1.442695, %v1147_v34  ;;  %v1175_v49 = vmul.f32 1.442695, %v1148_v30 }
 0x1cf   : > { %v2001_v29 = vpop.eup %2000  ;;  %v494_v33 = vmul.f32 %v1999_v38, %v2467_v50  ;;  %v2667_v3 = vpop.permute.xlu0 %852  ;;  %v2678_v50 = vmul.f32 %v763_v61, %v2563_v36  ;;  %2020 = vpow2.f32 %v1169_v45  ;;  %v766_v61 = vld [vmem:[%s2560_s7 + $0x78] sm:$0xff]  ;;  %v1150_v63 = vmin.f32 %v2697_v10, 4.1351666 }
 0x1d0   : > { %v2003_v8 = vpop.eup %2002  ;;  %v496_v44 = vmul.f32 %v2001_v29, %v2471_v51  ;;  %v2674_v54 = vpop.permute.xlu1 %857  ;;  %v3485_v51 = vmov 0  ;;  %2022 = vpow2.f32 %v1171_v27  ;;  %v2730_v34 = vmul.f32 %v766_v61, %v2563_v36 }
 0x1d1   : > { %v2005_v55 = vpop.eup %2004  ;;  %513 = vst.msk [vmem:[%s2570_s10 + $0x60] sm:$0xff] %vm324_vm0, %v494_v33  ;;  %v3486_v51 = vsel %vm2685_vm3, 4294967295, %v3485_v51  ;;  %v1149_v25 = vmin.f32 %v2678_v50, 4.1351666  ;;  %v1187_v5 = vmul.f32 0.5, %v2003_v8  ;;  %2024 = vpow2.f32 %v1173_v37 }
 0x1d2   : > { %v2007_v26 = vpop.eup %2006  ;;  %514 = vst.msk [vmem:[%s2570_s10 + $0x68] sm:$0xff] %vm324_vm0, %v496_v44  ;;  %3487 = vst [vmem:[#allocation3_spill] sm:$0xff] %v3486_v51  ;;  %v1186_v22 = vmul.f32 0.5, %v2005_v55  ;;  %v1151_v44 = vmin.f32 %v2707_v39, 4.1351666  ;;  %2026 = vpow2.f32 %v1175_v49  ;;  %v3500_v51 = vmov 1  }
 0x1d3   : > { %v2009_v19 = vpop.eup %2008  ;;  %v498_v56 = vmul.f32 %v2007_v26, %v2475_v13  ;;  %v2691_v28 = vpop.permute.xlu0 %862  ;;  %v1177_v33 = vmul.f32 1.442695, %v1149_v25  ;;  %v1179_v36 = vmul.f32 1.442695, %v1150_v63 }
 0x1d4   : > { %v500_v40 = vmul.f32 %v2009_v19, %v2479_v12  ;;  %v867_v57 = vpop.permute.xlu1 %866  ;;  %v2011_v24 = vpop.eup %2010  ;;  %v1181_v30 = vmul.f32 1.442695, %v1151_v44 }
 0x1d5   : > { %515 = vst.msk [vmem:[%s2570_s10 + $0x70] sm:$0xff] %vm324_vm0, %v498_v56  ;;  %v2704_v13 = vsel %vm2685_vm3, %v2485_v16, %v867_v57  ;;  %v2013_v38 = vpop.eup %2012  ;;  %v1188_v26 = vmul.f32 0.5, %v2011_v24  ;;  %2028 = vpow2.f32 %v1177_v33 }
 0x1d6   : > { %516 = vst.msk [vmem:[%s2570_s10 + $0x78] sm:$0xff] %vm324_vm0, %v500_v40  ;;  %v2712_v12 = vmul.f32 %v1185_v23, %v2704_v13  ;;  %v2015_v55 = vpop.eup %2014  ;;  %v1152_v40 = vmin.f32 %v2730_v34, 4.1351666  ;;  %2030 = vpow2.f32 %v1179_v36 }
 0x1d7   : > { %v2017_v23 = vpop.eup %2016  ;;  %v1190_v25 = vmul.f32 0.5, %v2015_v55  ;;  %2032 = vpow2.f32 %v1181_v30 }
 0x1d8   : > { %v875_v29 = vpop.permute.xlu1 %874  ;;  %1233 = vrot.lane.b32.xlu0 %v2712_v12, %s2046_s29  ;;  %v871_v16 = vpop.permute.xlu0 %870  ;;  %v1191_v24 = vmul.f32 0.5, %v2017_v23  ;;  %v1183_v49 = vmul.f32 1.442695, %v1152_v40 }
 0x1d9   : > { %v2721_v1 = vsel %vm2685_vm3, %v2500_v59, %v875_v29  ;;  %v2726_v8 = vsel %vm2685_vm3, %v2494_v60, %v871_v16  ;;  %v1189_v59 = vmul.f32 0.5, %v2013_v38  ;;  %v2019_v19 = vpop.eup %2018 }
 0x1da   : > { %v2733_v45 = vmul.f32 %v1187_v5, %v2721_v1  ;;  %v2736_v17 = vmul.f32 %v1186_v22, %v2726_v8  ;;  %v2021_v5 = vpop.eup %2020  ;;  %v1192_v63 = vmul.f32 0.5, %v2019_v19  ;;  %2034 = vpow2.f32 %v1183_v49 }
 0x1db   : > { %v1193_v44 = vmul.f32 0.5, %v2021_v5 }
 0x1dc   : > { %v879_v4 = vpop.permute.xlu1 %878  ;;  %1237 = vrot.lane.b32.xlu0 %v2733_v45, %s2046_s29  ;;  %1235 = vrot.lane.b32.xlu1 %v2736_v17, %s2046_s29  ;;  %v883_v60 = vpop.permute.xlu0 %882 }
 0x1dd   : > { %v2745_v56 = vsel %vm2685_vm3, %v2490_v58, %v879_v4  ;;  %v2750_v27 = vsel %vm2685_vm3, %v2508_v14, %v883_v60  ;;  %v2023_v14 = vpop.eup %2022 }
 0x1de   : > { %v2754_v57 = vmul.f32 %v1188_v26, %v2745_v56  ;;  %v2757_v37 = vmul.f32 %v1189_v59, %v2750_v27  ;;  %v2025_v29 = vpop.eup %2024  ;;  %v1194_v36 = vmul.f32 0.5, %v2023_v14 }
 0x1df   : > { %v1195_v19 = vmul.f32 0.5, %v2025_v29 }
 0x1e0   : > { %3488 = vst [vmem:[#allocation5_spill] sm:$0xff] %v2757_v37  ;;  %v887_v22 = vpop.permute.xlu1 %886  ;;  %1239 = vrot.lane.b32.xlu1 %v2754_v57, %s2046_s29  ;;  %1241 = vrot.lane.b32.xlu0 %v2757_v37, %s2046_s29  ;;  %v891_v58 = vpop.permute.xlu0 %890 }
 0x1e1   : > { %v2766_v61 = vsel %vm2685_vm3, %v2496_v20, %v887_v22  ;;  %v2771_v38 = vsel %vm2685_vm3, %v2512_v11, %v891_v58  ;;  %v2027_v11 = vpop.eup %2026 }
 0x1e2   : > { %v2774_v16 = vmul.f32 %v1190_v25, %v2766_v61  ;;  %v2777_v33 = vmul.f32 %v1191_v24, %v2771_v38  ;;  %v2029_v23 = vpop.eup %2028  ;;  %v1196_v22 = vmul.f32 0.5, %v2027_v11 }
 0x1e3   : > { %v2031_v25 = vpop.eup %2030  ;;  %v1197_v58 = vmul.f32 0.5, %v2029_v23 }
 0x1e4   : > { %3489 = vst [vmem:[#allocation7_spill] sm:$0xff] %v2774_v16  ;;  %3490 = vst [vmem:[#allocation9_spill] sm:$0xff] %v2777_v33  ;;  %v895_v55 = vpop.permute.xlu1 %894  ;;  %1243 = vrot.lane.b32.xlu1 %v2774_v16, %s2046_s29  ;;  %1245 = vrot.lane.b32.xlu0 %v2777_v33, %s2046_s29  ;;  %v899_v20 = vpop.permute.xlu0 %898 }
 0x1e5   : > { %v2786_v26 = vsel %vm2685_vm3, %v2504_v6, %v895_v55  ;;  %v2791_v59 = vsel %vm2685_vm3, %v2518_v31, %v899_v20  ;;  %v2033_v14 = vpop.eup %2032  ;;  %v1198_v55 = vmul.f32 0.5, %v2031_v25 }
 0x1e6   : > { %v2794_v4 = vmul.f32 %v1192_v63, %v2786_v26  ;;  %v2797_v60 = vmul.f32 %v1193_v44, %v2791_v59  ;;  %v1199_v20 = vmul.f32 0.5, %v2033_v14  ;;  %v2035_v11 = vpop.eup %2034 }
 0x1e8   : > { %3491 = vst [vmem:[#allocation2_spill] sm:$0xff] %v2794_v4  ;;  %3492 = vst [vmem:[#allocation4_spill] sm:$0xff] %v2797_v60  ;;  %v903_v30 = vpop.permute.xlu1 %902  ;;  %1247 = vrot.lane.b32.xlu1 %v2794_v4, %s2046_s29  ;;  %1249 = vrot.lane.b32.xlu0 %v2797_v60, %s2046_s29  ;;  %v907_v6 = vpop.permute.xlu0 %906 }
 0x1e9   : > { %v2806_v31 = vsel %vm2685_vm3, %v2540_v47, %v903_v30  ;;  %v2811_v40 = vsel %vm2685_vm3, %v2548_v15, %v907_v6  ;;  %v1200_v6 = vmul.f32 0.5, %v2035_v11 }
 0x1ea   : > { %v2814_v24 = vmul.f32 %v1194_v36, %v2806_v31  ;;  %v2817_v5 = vmul.f32 %v1195_v19, %v2811_v40 }
 0x1ec   : > { %3493 = vst [vmem:[#allocation6_spill] sm:$0xff] %v2814_v24  ;;  %3494 = vst [vmem:[#allocation8_spill] sm:$0xff] %v2817_v5  ;;  %v911_v49 = vpop.permute.xlu1 %910  ;;  %1251 = vrot.lane.b32.xlu1 %v2814_v24, %s2046_s29  ;;  %1253 = vrot.lane.b32.xlu0 %v2817_v5, %s2046_s29  ;;  %v915_v47 = vpop.permute.xlu0 %914 }
 0x1ed   : > { %v2826_v15 = vsel %vm2685_vm3, %v2546_v18, %v911_v49  ;;  %v2831_v29 = vsel %vm2685_vm3, %v2653_v62, %v915_v47 }
 0x1ee   : > { %v2834_v63 = vmul.f32 %v1196_v22, %v2826_v15  ;;  %v2837_v44 = vmul.f32 %v1197_v58, %v2831_v29 }
 0x1f0   : > { %3495 = vst [vmem:[#allocation10_spill] sm:$0xff] %v2834_v63  ;;  %3496 = vst [vmem:[#allocation11_spill] sm:$0xff] %v2837_v44  ;;  %v919_v23 = vpop.permute.xlu1 %918  ;;  %1255 = vrot.lane.b32.xlu1 %v2834_v63, %s2046_s29  ;;  %1257 = vrot.lane.b32.xlu0 %v2837_v44, %s2046_s29  ;;  %v923_v18 = vpop.permute.xlu0 %922 }
 0x1f1   : > { %v2846_v62 = vsel %vm2685_vm3, %v2667_v3, %v919_v23  ;;  %v2851_v36 = vsel %vm2685_vm3, %v2674_v54, %v923_v18 }
 0x1f2   : > { %v2854_v19 = vmul.f32 %v1198_v55, %v2846_v62  ;;  %v2857_v30 = vmul.f32 %v1199_v20, %v2851_v36 }
 0x1f4   : > { %3497 = vst [vmem:[#allocation12_spill] sm:$0xff] %v2854_v19  ;;  %3498 = vst [vmem:[#allocation13_spill] sm:$0xff] %v2857_v30  ;;  %v927_v25 = vpop.permute.xlu1 %926  ;;  %1259 = vrot.lane.b32.xlu1 %v2854_v19, %s2046_s29  ;;  %1261 = vrot.lane.b32.xlu0 %v2857_v30, %s2046_s29 }
 0x1f5   : > { %v2866_v3 = vsel %vm2685_vm3, %v2691_v28, %v927_v25  ;;  %v948_v54 = vpop.permute.xlu0 %947 }
 0x1f6   : > { %v2869_v22 = vmul.f32 %v1200_v6, %v2866_v3 }
 0x1f8   : > { %1263 = vrot.lane.b32.xlu1 %v2869_v22, %s2046_s29  ;;  %1281 = vrot.lane.b32.xlu0 %v2712_v12, %s2051_s11 }
 0x1f9   : > { %v953_v58 = vpop.permute.xlu1 %952 }
 0x1fa   : > { %v1031_v14 = vpop.permute.xlu0 %1030 }
 0x1fc   : > { %1283 = vrot.lane.b32.xlu1 %v2736_v17, %s2051_s11  ;;  %1285 = vrot.lane.b32.xlu0 %v2733_v45, %s2051_s11 }
 0x1fd   : > { %v958_v28 = vpop.permute.xlu1 %957 }
 0x1fe   : > { %v1043_v49 = vpop.permute.xlu0 %1042 }
 0x200   : > { %1287 = vrot.lane.b32.xlu1 %v2754_v57, %s2051_s11  ;;  %1289 = vrot.lane.b32.xlu0 %v2757_v37, %s2051_s11 }
 0x201   : > { %v968_v47 = vpop.permute.xlu1 %967 }
 0x202   : > { %v1051_v55 = vpop.permute.xlu0 %1050 }
 0x204   : > { %1291 = vrot.lane.b32.xlu1 %v2774_v16, %s2051_s11  ;;  %1293 = vrot.lane.b32.xlu0 %v2777_v33, %s2051_s11 }
 0x205   : > { %v978_v20 = vpop.permute.xlu1 %977 }
 0x206   : > { %v1059_v11 = vpop.permute.xlu0 %1058 }
 0x208   : > { %1295 = vrot.lane.b32.xlu1 %v2794_v4, %s2051_s11  ;;  %1297 = vrot.lane.b32.xlu0 %v2797_v60, %s2051_s11 }
 0x209   : > { %v988_v23 = vpop.permute.xlu1 %987 }
 0x20a   : > { %v2891_v18 = vpop.permute.xlu0 %1066 }
 0x20c   : > { %1299 = vrot.lane.b32.xlu1 %v2814_v24, %s2051_s11  ;;  %1301 = vrot.lane.b32.xlu0 %v2817_v5, %s2051_s11  ;;  %v1090_v24 = vsel %vm2685_vm3, %v953_v58, %v1031_v14  ;;  %v1095_v58 = vsel %vm2685_vm3, %v978_v20, %v1051_v55 }
 0x20d   : > { %v2897_v6 = vpop.permute.xlu1 %997 }
 0x20e   : > { %v2899_v25 = vpop.permute.xlu0 %1074 }
 0x210   : > { %1303 = vrot.lane.b32.xlu1 %v2834_v63, %s2051_s11  ;;  %1305 = vrot.lane.b32.xlu0 %v2837_v44, %s2051_s11  ;;  %v1106_v63 = vmul.f32 %v2726_v8, %v2589_v21  ;;  %v1105_v44 = vmul.f32 %v2704_v13, %v2574_v2  ;;  %v1107_v21 = vmul.f32 %v2721_v1, %v2584_v52 }
 0x211   : > { %v2905_v43 = vpop.permute.xlu1 %1007 }
 0x212   : > { %v2907_v60 = vpop.permute.xlu0 %1082  ;;  %v2923_v33 = vadd.f32 %v1106_v63, %v1090_v24  ;;  %v1093_v24 = vsel %vm2685_vm3, %v968_v47, %v1043_v49  ;;  %v1108_v63 = vmul.f32 %v2745_v56, %v2604_v32  ;;  %v1110_v32 = vmul.f32 %v2766_v61, %v2619_v0 }
 0x213   : > { %v1097_v0 = vsel %vm2685_vm3, %v988_v23, %v1059_v11  ;;  %v1113_v61 = vmul.f32 %v2791_v59, %v2642_v42  ;;  %v1114_v42 = vmul.f32 %v2806_v31, %v2650_v35  ;;  %v1101_v35 = vsel %vm2685_vm3, %v2905_v43, %v2899_v25 }
 0x214   : > { %1307 = vrot.lane.b32.xlu1 %v2854_v19, %s2051_s11  ;;  %1309 = vrot.lane.b32.xlu0 %v2857_v30, %s2051_s11  ;;  %v1117_v31 = vmul.f32 %v2831_v29, %v2678_v50  ;;  %v1118_v50 = vmul.f32 %v2846_v62, %v2697_v10  ;;  %v1120_v10 = vmul.f32 %v2866_v3, %v2730_v34 }
 0x215   : > { %v2913_v5 = vpop.permute.xlu1 %1017  ;;  %v2981_v49 = vadd.f32 %v1113_v61, %v1097_v0  ;;  %v3102_v61 = vld [vmem:[%s3081_s15 + $0x10] sm:$0xff] }
 0x217   : > { %v963_v4 = vpop.permute.xlu0 %962 }
 0x218   : > { %1311 = vrot.lane.b32.xlu1 %v2869_v22, %s2051_s11 }
 0x21a   : > { %v1027_v19 = vpop.permute.xlu1 %1026 }
 0x21b   : > { %v1089_v30 = vsel %vm2685_vm3, %v948_v54, %v1027_v19  ;;  %v973_v37 = vpop.permute.xlu0 %972 }
 0x21c   : > { %v2927_v16 = vadd.f32 %v1105_v44, %v1089_v30  ;;  %1364 = vrot.lane.b32.xlu1 %v2923_v33, %s2052_s12  ;;  %v1109_v44 = vmul.f32 %v2750_v27, %v2609_v46  ;;  %v1111_v46 = vmul.f32 %v2771_v38, %v2626_v41  ;;  %v1112_v41 = vmul.f32 %v2786_v26, %v2633_v53 }
 0x21d   : > { %v1099_v53 = vsel %vm2685_vm3, %v2897_v6, %v2891_v18  ;;  %v1115_v26 = vmul.f32 %v2811_v40, %v2656_v48  ;;  %v1116_v48 = vmul.f32 %v2826_v15, %v2671_v9  ;;  %v3017_v6 = vadd.f32 %v1117_v31, %v1101_v35  ;;  %v731_v35 = vld [vmem:[%s3081_s15 + $0x30] sm:$0xff] }
 0x21e   : > { %v1035_v8 = vpop.permute.xlu1 %1034  ;;  %1362 = vrot.lane.b32.xlu0 %v2927_v16, %s2052_s12  ;;  %v2949_v30 = vadd.f32 %v1109_v44, %v1093_v24  ;;  %v1103_v9 = vsel %vm2685_vm3, %v2913_v5, %v2907_v60  ;;  %v1119_v15 = vmul.f32 %v2851_v36, %v2707_v39 }
 0x21f   : > { %v1091_v2 = vsel %vm2685_vm3, %v958_v28, %v1035_v8  ;;  %v983_v19 = vpop.permute.xlu0 %982  ;;  %v2999_v11 = vadd.f32 %v1115_v26, %v1099_v53  ;;  %v3107_v53 = vld [vmem:[%s3081_s15 + $0x38] sm:$0xff] }
 0x220   : > { %v2937_v13 = vadd.f32 %v1107_v21, %v1091_v2  ;;  %v3035_v8 = vadd.f32 %v1119_v15, %v1103_v9  ;;  %v733_v9 = vld [vmem:[%s3081_s15 + $0x40] sm:$0xff] }
 0x222   : > { %v1039_v52 = vpop.permute.xlu1 %1038  ;;  %1366 = vrot.lane.b32.xlu0 %v2937_v13, %s2052_s12 }
 0x223   : > { %v1092_v1 = vsel %vm2685_vm3, %v963_v4, %v1039_v52  ;;  %v2965_v4 = vadd.f32 %v1111_v46, %v1095_v58  ;;  %v993_v14 = vpop.permute.xlu0 %992  ;;  %v3088_v58 = vld [vmem:[%s3081_s15] sm:$0xff] }
 0x224   : > { %v2951_v54 = vadd.f32 %v1108_v63, %v1092_v1 }
 0x226   : > { %v1047_v56 = vpop.permute.xlu1 %1046  ;;  %1370 = vrot.lane.b32.xlu0 %v2949_v30, %s2052_s12  ;;  %1368 = vrot.lane.b32.xlu1 %v2951_v54, %s2052_s12 }
 0x227   : > { %v1094_v27 = vsel %vm2685_vm3, %v973_v37, %v1047_v56  ;;  %v1003_v59 = vpop.permute.xlu0 %1002  ;;  %v3094_v56 = vld [vmem:[%s3081_s15 + $0x18] sm:$0xff] }
 0x228   : > { %v2967_v28 = vadd.f32 %v1110_v32, %v1094_v27  ;;  %v726_v27 = vld [vmem:[%s3081_s15 + $0x8] sm:$0xff] }
 0x22a   : > { %v1055_v38 = vpop.permute.xlu1 %1054  ;;  %1374 = vrot.lane.b32.xlu0 %v2965_v4, %s2052_s12  ;;  %1372 = vrot.lane.b32.xlu1 %v2967_v28, %s2052_s12 }
 0x22b   : > { %v1096_v37 = vsel %vm2685_vm3, %v983_v19, %v1055_v38  ;;  %v1013_v21 = vpop.permute.xlu0 %1012 }
 0x22c   : > { %v2983_v47 = vadd.f32 %v1112_v41, %v1096_v37  ;;  %v3099_v41 = vld [vmem:[%s3081_s15 + $0x28] sm:$0xff] }
 0x22e   : > { %v1063_v55 = vpop.permute.xlu1 %1062  ;;  %1378 = vrot.lane.b32.xlu0 %v2981_v49, %s2052_s12  ;;  %1376 = vrot.lane.b32.xlu1 %v2983_v47, %s2052_s12 }
 0x22f   : > { %v1098_v20 = vsel %vm2685_vm3, %v993_v14, %v1063_v55  ;;  %v1023_v60 = vpop.permute.xlu0 %1022 }
 0x230   : > { %v3001_v23 = vadd.f32 %v1114_v42, %v1098_v20  ;;  %v729_v42 = vld [vmem:[%s3081_s15 + $0x20] sm:$0xff]  ;;  %v3115_v20 = vld [vmem:[%s3081_s15 + $0x48] sm:$0xff] }
 0x232   : > { %v1071_v40 = vpop.permute.xlu1 %1070  ;;  %1382 = vrot.lane.b32.xlu0 %v2999_v11, %s2052_s12  ;;  %1380 = vrot.lane.b32.xlu1 %v3001_v23, %s2052_s12 }
 0x233   : > { %v1100_v18 = vsel %vm2685_vm3, %v1003_v59, %v1071_v40 }
 0x234   : > { %v3019_v43 = vadd.f32 %v1116_v48, %v1100_v18 }
 0x236   : > { %v1079_v29 = vpop.permute.xlu1 %1078  ;;  %1386 = vrot.lane.b32.xlu0 %v3017_v6, %s2052_s12  ;;  %1384 = vrot.lane.b32.xlu1 %v3019_v43, %s2052_s12 }
 0x237   : > { %v1102_v25 = vsel %vm2685_vm3, %v1013_v21, %v1079_v29  ;;  %v736_v21 = vld [vmem:[%s3081_s15 + $0x58] sm:$0xff] }
 0x238   : > { %v3037_v2 = vadd.f32 %v1118_v50, %v1102_v25 }
 0x23a   : > { %v1087_v5 = vpop.permute.xlu1 %1086  ;;  %1390 = vrot.lane.b32.xlu0 %v3035_v8, %s2052_s12  ;;  %1388 = vrot.lane.b32.xlu1 %v3037_v2, %s2052_s12 }
 0x23b   : > { %v1104_v39 = vsel %vm2685_vm3, %v1023_v60, %v1087_v5  ;;  %v735_v60 = vld [vmem:[%s3081_s15 + $0x50] sm:$0xff] }
 0x23c   : > { %v3047_v62 = vadd.f32 %v1120_v10, %v1104_v39  ;;  %v738_v10 = vld [vmem:[%s3081_s15 + $0x68] sm:$0xff] }
 0x23e   : > { %3499 = vst [vmem:[#allocation14_spill] sm:$0xff] %v3047_v62  ;;  %1410 = vrot.lane.b32.xlu0 %v2927_v16, %s2044_s28  ;;  %1392 = vrot.lane.b32.xlu1 %v3047_v62, %s2052_s12 }
 0x242   : > { %1414 = vrot.lane.b32.xlu0 %v2937_v13, %s2044_s28  ;;  %1412 = vrot.lane.b32.xlu1 %v2923_v33, %s2044_s28 }
 0x246   : > { %1418 = vrot.lane.b32.xlu0 %v2949_v30, %s2044_s28  ;;  %1416 = vrot.lane.b32.xlu1 %v2951_v54, %s2044_s28 }
 0x24a   : > { %1422 = vrot.lane.b32.xlu0 %v2965_v4, %s2044_s28  ;;  %1420 = vrot.lane.b32.xlu1 %v2967_v28, %s2044_s28  ;;  %v1234_v34 = vpop.permute.xlu0 %1233 }
 0x24e   : > { %v1236_v36 = vpop.permute.xlu1 %1235  ;;  %1426 = vrot.lane.b32.xlu0 %v2981_v49, %s2044_s28  ;;  %1424 = vrot.lane.b32.xlu1 %v2983_v47, %s2044_s28  ;;  %v1238_v3 = vpop.permute.xlu0 %1237 }
 0x252   : > { %v1240_v24 = vpop.permute.xlu1 %1239  ;;  %1430 = vrot.lane.b32.xlu0 %v2999_v11, %s2044_s28  ;;  %1428 = vrot.lane.b32.xlu1 %v3001_v23, %s2044_s28  ;;  %v1242_v63 = vpop.permute.xlu0 %1241 }
 0x256   : > { %v1244_v44 = vpop.permute.xlu1 %1243  ;;  %1434 = vrot.lane.b32.xlu0 %v3017_v6, %s2044_s28  ;;  %1432 = vrot.lane.b32.xlu1 %v3019_v43, %s2044_s28  ;;  %v1246_v19 = vpop.permute.xlu0 %1245 }
 0x25a   : > { %v1248_v52 = vpop.permute.xlu1 %1247  ;;  %1438 = vrot.lane.b32.xlu0 %v3035_v8, %s2044_s28  ;;  %1436 = vrot.lane.b32.xlu1 %v3037_v2, %s2044_s28  ;;  %v1250_v1 = vpop.permute.xlu0 %1249 }
 0x25e   : > { %v1252_v32 = vpop.permute.xlu1 %1251  ;;  %1543 = vperm.xlu0 %1936, %v3088_v58   ;;  %1440 = vrot.lane.b32.xlu1 %v3047_v62, %s2044_s28  ;;  %v1254_v46 = vpop.permute.xlu0 %1253 }
 0x262   : > { %v1256_v14 = vpop.permute.xlu1 %1255  ;;  %1558 = vperm.xlu0 %1936, %v3094_v56   ;;  %1548 = vperm.xlu1 %1937, %v726_v27   ;;  %v1258_v0 = vpop.permute.xlu0 %1257 }
 0x266   : > { %v1260_v38 = vpop.permute.xlu1 %1259  ;;  %1568 = vperm.xlu0 %1936, %v3099_v41   ;;  %1553 = vperm.xlu1 %1937, %v3102_v61   ;;  %v1262_v37 = vpop.permute.xlu0 %1261 }
 0x26a   : > { %v1264_v26 = vpop.permute.xlu1 %1263  ;;  %1578 = vperm.xlu0 %1936, %v3107_v53   ;;  %1563 = vperm.xlu1 %1937, %v729_v42   ;;  %v1282_v59 = vpop.permute.xlu0 %1281 }
 0x26b   : > { %v3112_v55 = vsel %vm1329_vm4, %v1234_v34, %v1282_v59  ;;  %v737_v59 = vld [vmem:[%s3081_s15 + $0x60] sm:$0xff] }
 0x26e   : > { %v1284_v48 = vpop.permute.xlu1 %1283  ;;  %1588 = vperm.xlu0 %1936, %v3115_v20   ;;  %1573 = vperm.xlu1 %1937, %v731_v35   ;;  %v1286_v31 = vpop.permute.xlu0 %1285 }
 0x26f   : > { %v3120_v40 = vsel %vm1329_vm4, %v1236_v36, %v1284_v48  ;;  %v3123_v18 = vsel %vm1329_vm4, %v1238_v3, %v1286_v31  ;;  %v740_v3 = vld [vmem:[%s3081_s15 + $0x78] sm:$0xff] }
 0x272   : > { %v1288_v50 = vpop.permute.xlu1 %1287  ;;  %1598 = vperm.xlu0 %1936, %v736_v21   ;;  %1583 = vperm.xlu1 %1937, %v733_v9   ;;  %v1290_v15 = vpop.permute.xlu0 %1289 }
 0x273   : > { %v3128_v29 = vsel %vm1329_vm4, %v1240_v24, %v1288_v50  ;;  %v3131_v25 = vsel %vm1329_vm4, %v1242_v63, %v1290_v15  ;;  %v739_v50 = vld [vmem:[%s3081_s15 + $0x70] sm:$0xff] }
 0x276   : > { %v1292_v5 = vpop.permute.xlu1 %1291  ;;  %1608 = vperm.xlu0 %1936, %v738_v10   ;;  %1593 = vperm.xlu1 %1937, %v735_v60   ;;  %v1294_v39 = vpop.permute.xlu0 %1293 }
 0x277   : > { %v3136_v34 = vsel %vm1329_vm4, %v1244_v44, %v1292_v5  ;;  %v3139_v36 = vsel %vm1329_vm4, %v1246_v19, %v1294_v39 }
 0x27a   : > { %v1296_v24 = vpop.permute.xlu1 %1295  ;;  %1618 = vperm.xlu0 %1936, %v740_v3   ;;  %1603 = vperm.xlu1 %1937, %v737_v59   ;;  %v1298_v63 = vpop.permute.xlu0 %1297 }
 0x27b   : > { %v3144_v48 = vsel %vm1329_vm4, %v1248_v52, %v1296_v24  ;;  %v3147_v31 = vsel %vm1329_vm4, %v1250_v1, %v1298_v63 }
 0x27e   : > { %v1300_v15 = vpop.permute.xlu1 %1299  ;;  %1939 = vset.pattern.permute.xlu0 %v3500_v51  ;;  %1613 = vperm.xlu1 %1937, %v739_v50   ;;  %v1302_v44 = vpop.permute.xlu0 %1301 }
 0x27f   : > { %v3152_v19 = vsel %vm1329_vm4, %v1252_v32, %v1300_v15  ;;  %v3155_v5 = vsel %vm1329_vm4, %v1254_v46, %v1302_v44  ;;  %1626 = vperm.xlu0 %1939, %v726_v27  }
 0x282   : > { %v1304_v39 = vpop.permute.xlu1 %1303  ;;  %1938 = vset.pattern.permute.xlu1 %v3500_v51  ;;  %v1306_v52 = vpop.permute.xlu0 %1305 }
 0x283   : > { %v3159_v1 = vsel %vm1329_vm4, %v1256_v14, %v1304_v39  ;;  %v3162_v24 = vsel %vm1329_vm4, %v1258_v0, %v1306_v52  ;;  %1638 = vperm.xlu0 %1939, %v729_v42   ;;  %1622 = vperm.xlu1 %1938, %v3088_v58  }
 0x286   : > { %v1308_v63 = vpop.permute.xlu1 %1307  ;;  %v1310_v32 = vpop.permute.xlu0 %1309 }
 0x287   : > { %v3166_v15 = vsel %vm1329_vm4, %v1260_v38, %v1308_v63  ;;  %v3169_v46 = vsel %vm1329_vm4, %v1262_v37, %v1310_v32  ;;  %1646 = vperm.xlu0 %1939, %v731_v35   ;;  %1630 = vperm.xlu1 %1938, %v3102_v61  }
 0x28a   : > { %v1312_v51 = vpop.permute.xlu1 %1311 }
 0x28b   : > { %v3173_v27 = vsel %vm1329_vm4, %v1264_v26, %v1312_v51  ;;  %1654 = vperm.xlu0 %1939, %v733_v9   ;;  %1634 = vperm.xlu1 %1938, %v3094_v56  }
 0x28e   : > { %v1365_v14 = vpop.permute.xlu1 %1364 }
 0x28f   : > { %1662 = vperm.xlu0 %1939, %v735_v60   ;;  %1642 = vperm.xlu1 %1938, %v3099_v41  }
 0x290   : > { %v1363_v58 = vpop.permute.xlu0 %1362 }
 0x293   : > { %1670 = vperm.xlu0 %1939, %v737_v59   ;;  %1650 = vperm.xlu1 %1938, %v3107_v53  }
 0x294   : > { %v1367_v0 = vpop.permute.xlu0 %1366 }
 0x297   : > { %1678 = vperm.xlu0 %1939, %v739_v50   ;;  %1658 = vperm.xlu1 %1938, %v3115_v20   ;;  %v1475_v50 = vsub.f32 %v2927_v16, %v3112_v55  ;;  %v1477_v16 = vsub.f32 %v2937_v13, %v3123_v18  ;;  %v1478_v13 = vsub.f32 %v2951_v54, %v3128_v29 }
 0x298   : > { %v1369_v61 = vpop.permute.xlu1 %1368  ;;  %v1371_v38 = vpop.permute.xlu0 %1370  ;;  %v1481_v29 = vsub.f32 %v2965_v4, %v3139_v36  ;;  %v1482_v4 = vsub.f32 %v2983_v47, %v3144_v48  ;;  %v1484_v48 = vsub.f32 %v3001_v23, %v3152_v19  ;;  %v1486_v19 = vsub.f32 %v3019_v43, %v3159_v1 }
 0x299   : > { %v1488_v1 = vsub.f32 %v3037_v2, %v3166_v15  ;;  %v3512_v2 = vld [vmem:[#allocation14_spill] sm:$0xff] }
 0x29a   : > { %v1490_v15 = vsub.f32 %v3512_v2, %v3173_v27 }
 0x29b   : > { %1666 = vperm.xlu1 %1938, %v736_v21  }
 0x29c   : > { %v1373_v37 = vpop.permute.xlu1 %1372  ;;  %v1375_v42 = vpop.permute.xlu0 %1374 }
 0x29f   : > { %1674 = vperm.xlu1 %1938, %v738_v10  }
 0x2a0   : > { %v1377_v26 = vpop.permute.xlu1 %1376  ;;  %v1379_v56 = vpop.permute.xlu0 %1378 }
 0x2a3   : > { %1682 = vperm.xlu1 %1938, %v740_v3  }
 0x2a4   : > { %v3179_v35 = vpop.permute.xlu1 %1380  ;;  %v3181_v41 = vpop.permute.xlu0 %1382 }
 0x2a8   : > { %v3183_v9 = vpop.permute.xlu1 %1384  ;;  %v3185_v53 = vpop.permute.xlu0 %1386 }
 0x2ac   : > { %v3187_v60 = vpop.permute.xlu1 %1388  ;;  %v3189_v20 = vpop.permute.xlu0 %1390 }
 0x2b0   : > { %v3191_v21 = vpop.permute.xlu1 %1392  ;;  %v1411_v59 = vpop.permute.xlu0 %1410 }
 0x2b1   : > { %v1459_v10 = vsel %vm1458_vm5, %v1363_v58, %v1411_v59 }
 0x2b2   : > { %v1491_v3 = vadd.f32 %v1459_v10, %v2712_v12  ;;  %v1476_v12 = vsub.f32 %v2923_v33, %v3120_v40 }
 0x2b4   : > { %v1893_v44 = vadd.f32 -1.0, %v1491_v3  ;;  %v1413_v39 = vpop.permute.xlu1 %1412  ;;  %v1415_v52 = vpop.permute.xlu0 %1414  ;;  %v3501_v3 = vld [vmem:[#allocation5_spill] sm:$0xff] }
 0x2b5   : > { %v1460_v63 = vsel %vm1458_vm5, %v1365_v14, %v1413_v39  ;;  %v1461_v32 = vsel %vm1458_vm5, %v1367_v0, %v1415_v52  ;;  %v3502_v52 = vld [vmem:[#allocation7_spill] sm:$0xff] }
 0x2b6   : > { %v1492_v51 = vadd.f32 %v1460_v63, %v2736_v17  ;;  %v1493_v62 = vadd.f32 %v1461_v32, %v2733_v45  ;;  %v3204_v58 = vsel %vm744_vm6, %v1475_v50, %v1893_v44  ;;  %v3503_v32 = vld [vmem:[#allocation9_spill] sm:$0xff] }
 0x2b8   : > { %v1894_v55 = vadd.f32 -1.0, %v1492_v51  ;;  %v1895_v59 = vadd.f32 -1.0, %v1493_v62  ;;  %v1417_v10 = vpop.permute.xlu1 %1416  ;;  %v1419_v14 = vpop.permute.xlu0 %1418  ;;  %v1479_v62 = vsub.f32 %v2949_v30, %v3131_v25  ;;  %v1480_v30 = vsub.f32 %v2967_v28, %v3136_v34 }
 0x2b9   : > { %v1462_v0 = vsel %vm1458_vm5, %v1369_v61, %v1417_v10  ;;  %v1463_v17 = vsel %vm1458_vm5, %v1371_v38, %v1419_v14  ;;  %v3504_v10 = vld [vmem:[#allocation2_spill] sm:$0xff]  ;;  %v1483_v34 = vsub.f32 %v2981_v49, %v3147_v31  ;;  %v1485_v31 = vsub.f32 %v2999_v11, %v3155_v5 }
 0x2ba   : > { %v1494_v45 = vadd.f32 %v1462_v0, %v2754_v57  ;;  %v1495_v39 = vadd.f32 %v1463_v17, %v3501_v3  ;;  %v3216_v50 = vsel %vm744_vm6, %v1476_v12, %v1894_v55  ;;  %v3220_v33 = vsel %vm744_vm6, %v1477_v16, %v1895_v59  ;;  %v3505_v0 = vld [vmem:[#allocation4_spill] sm:$0xff] }
 0x2bb   : > { %v1487_v5 = vsub.f32 %v3017_v6, %v3162_v24  ;;  %v1489_v24 = vsub.f32 %v3035_v8, %v3169_v46 }
 0x2bc   : > { %v1896_v40 = vadd.f32 -1.0, %v1494_v45  ;;  %v1897_v18 = vadd.f32 -1.0, %v1495_v39  ;;  %v1421_v61 = vpop.permute.xlu1 %1420  ;;  %v1423_v57 = vpop.permute.xlu0 %1422 }
 0x2bd   : > { %v1464_v38 = vsel %vm1458_vm5, %v1373_v37, %v1421_v61  ;;  %v1465_v44 = vsel %vm1458_vm5, %v1375_v42, %v1423_v57 }
 0x2be   : > { %v1496_v63 = vadd.f32 %v1464_v38, %v3502_v52  ;;  %v1497_v51 = vadd.f32 %v1465_v44, %v3503_v32  ;;  %v3232_v12 = vsel %vm744_vm6, %v1479_v62, %v1897_v18  ;;  %v3236_v54 = vsel %vm744_vm6, %v1478_v13, %v1896_v40  ;;  %v3506_v62 = vld [vmem:[#allocation6_spill] sm:$0xff]  ;;  %v3507_v18 = vld [vmem:[#allocation8_spill] sm:$0xff] }
 0x2c0   : > { %v1898_v25 = vadd.f32 -1.0, %v1496_v63  ;;  %v1899_v37 = vadd.f32 -1.0, %v1497_v51  ;;  %v1425_v42 = vpop.permute.xlu1 %1424  ;;  %v1427_v16 = vpop.permute.xlu0 %1426  ;;  %v3508_v63 = vld [vmem:[#allocation10_spill] sm:$0xff]  ;;  %v3509_v51 = vld [vmem:[#allocation11_spill] sm:$0xff] }
 0x2c1   : > { %v1466_v55 = vsel %vm1458_vm5, %v1377_v26, %v1425_v42  ;;  %v1467_v59 = vsel %vm1458_vm5, %v1379_v56, %v1427_v16  ;;  %v3510_v16 = vld [vmem:[#allocation12_spill] sm:$0xff] }
 0x2c2   : > { %v1498_v14 = vadd.f32 %v1466_v55, %v3504_v10  ;;  %v1499_v17 = vadd.f32 %v1467_v59, %v3505_v0  ;;  %v3248_v45 = vsel %vm744_vm6, %v1481_v29, %v1899_v37  ;;  %v3252_v28 = vsel %vm744_vm6, %v1480_v30, %v1898_v25  ;;  %v3511_v59 = vld [vmem:[#allocation13_spill] sm:$0xff] }
 0x2c4   : > { %v1900_v36 = vadd.f32 -1.0, %v1498_v14  ;;  %v1901_v26 = vadd.f32 -1.0, %v1499_v17  ;;  %v1429_v56 = vpop.permute.xlu1 %1428  ;;  %v1431_v3 = vpop.permute.xlu0 %1430 }
 0x2c5   : > { %v1468_v39 = vsel %vm1458_vm5, %v3179_v35, %v1429_v56  ;;  %v1469_v13 = vsel %vm1458_vm5, %v3181_v41, %v1431_v3 }
 0x2c6   : > { %v1500_v40 = vadd.f32 %v1468_v39, %v3506_v62  ;;  %v1501_v61 = vadd.f32 %v1469_v13, %v3507_v18  ;;  %v3266_v47 = vsel %vm744_vm6, %v1483_v34, %v1901_v26  ;;  %v3270_v49 = vsel %vm744_vm6, %v1482_v4, %v1900_v36 }
 0x2c8   : > { %v1902_v35 = vadd.f32 -1.0, %v1500_v40  ;;  %v1903_v41 = vadd.f32 -1.0, %v1501_v61  ;;  %v1433_v57 = vpop.permute.xlu1 %1432  ;;  %v1435_v38 = vpop.permute.xlu0 %1434 }
 0x2c9   : > { %v1470_v44 = vsel %vm1458_vm5, %v3183_v9, %v1433_v57  ;;  %v1471_v52 = vsel %vm1458_vm5, %v3185_v53, %v1435_v38 }
 0x2ca   : > { %v1502_v32 = vadd.f32 %v1470_v44, %v3508_v63  ;;  %v1503_v30 = vadd.f32 %v1471_v52, %v3509_v51  ;;  %v3284_v23 = vsel %vm744_vm6, %v1485_v31, %v1903_v41  ;;  %v3288_v11 = vsel %vm744_vm6, %v1484_v48, %v1902_v35 }
 0x2cb   : > { %v1702_v35 = vmax.f32 %v3216_v50, 0.0  ;;  %v1701_v63 = vmax.f32 %v3204_v58, 0.0  ;;  %v1705_v50 = vmax.f32 %v3232_v12, 0.0  ;;  %v1703_v58 = vmax.f32 %v3220_v33, 0.0 }
 0x2cc   : > { %v1904_v9 = vadd.f32 -1.0, %v1502_v32  ;;  %v1905_v53 = vadd.f32 -1.0, %v1503_v30  ;;  %v1437_v29 = vpop.permute.xlu1 %1436  ;;  %v1439_v25 = vpop.permute.xlu0 %1438  ;;  %v1707_v12 = vmax.f32 %v3248_v45, 0.0  ;;  %v1709_v45 = vmax.f32 %v3266_v47, 0.0 }
 0x2cd   : > { %v1472_v37 = vsel %vm1458_vm5, %v3187_v60, %v1437_v29  ;;  %v1473_v42 = vsel %vm1458_vm5, %v3189_v20, %v1439_v25  ;;  %v1711_v47 = vmax.f32 %v3284_v23, 0.0 }
 0x2ce   : > { %v1504_v55 = vadd.f32 %v1472_v37, %v3510_v16  ;;  %v1505_v10 = vadd.f32 %v1473_v42, %v3511_v59  ;;  %v3302_v43 = vsel %vm744_vm6, %v1487_v5, %v1905_v53  ;;  %v3306_v6 = vsel %vm744_vm6, %v1486_v19, %v1904_v9 }
 0x2cf   : > { %v1704_v16 = vmax.f32 %v3236_v54, 0.0  ;;  %v1706_v54 = vmax.f32 %v3252_v28, 0.0  ;;  %v1708_v28 = vmax.f32 %v3270_v49, 0.0  ;;  %v1713_v23 = vmax.f32 %v3302_v43, 0.0 }
 0x2d0   : > { %v1906_v60 = vadd.f32 -1.0, %v1504_v55  ;;  %v1907_v20 = vadd.f32 -1.0, %v1505_v10  ;;  %v1441_v14 = vpop.permute.xlu1 %1440  ;;  %v1710_v49 = vmax.f32 %v3288_v11, 0.0  ;;  %v1712_v11 = vmax.f32 %v3306_v6, 0.0 }
 0x2d1   : > { %v1474_v0 = vsel %vm1458_vm5, %v3191_v21, %v1441_v14 }
 0x2d2   : > { %v1506_v17 = vadd.f32 %v1474_v0, %v2869_v22  ;;  %v3317_v4 = vsel %vm744_vm6, %v1489_v24, %v1907_v20  ;;  %v3321_v34 = vsel %vm744_vm6, %v1488_v1, %v1906_v60 }
 0x2d4   : > { %v1908_v8 = vadd.f32 -1.0, %v1506_v17 }
 0x2d6   : > { %v3327_v46 = vsel %vm744_vm6, %v1490_v15, %v1908_v8 }
 0x2d7   : > { %v1716_v6 = vmax.f32 %v3327_v46, 0.0 }
 0x2dd   : > { %v1544_v36 = vpop.permute.xlu0 %1543 }
 0x2e1   : > { %v1549_v21 = vpop.permute.xlu1 %1548  ;;  %v1559_v26 = vpop.permute.xlu0 %1558 }
 0x2e5   : > { %v1554_v22 = vpop.permute.xlu1 %1553  ;;  %v1569_v56 = vpop.permute.xlu0 %1568 }
 0x2e9   : > { %v1564_v3 = vpop.permute.xlu1 %1563  ;;  %v3329_v39 = vpop.permute.xlu0 %1578 }
 0x2ed   : > { %v1574_v13 = vpop.permute.xlu1 %1573  ;;  %v3331_v62 = vpop.permute.xlu0 %1588 }
 0x2f1   : > { %v1584_v40 = vpop.permute.xlu1 %1583  ;;  %v3333_v18 = vpop.permute.xlu0 %1598 }
 0x2f5   : > { %v1594_v27 = vpop.permute.xlu1 %1593  ;;  %v3335_v61 = vpop.permute.xlu0 %1608 }
 0x2f9   : > { %v1604_v7 = vpop.permute.xlu1 %1603  ;;  %v3337_v48 = vpop.permute.xlu0 %1618 }
 0x2fd   : > { %v3339_v31 = vpop.permute.xlu1 %1613 }
 0x2fe   : > { %v1627_v41 = vpop.permute.xlu0 %1626 }
 0x2ff   : > { %v1686_v38 = vsel %vm2685_vm3, %v1549_v21, %v1627_v41 }
 0x300   : > { %v1718_v44 = vmin.f32 %v1702_v35, %v1686_v38 }
 0x302   : > { %1735 = vst.msk [vmem:[%s3346_s19 + $0x8] sm:$0xff] %vm1733_vm7, %v1718_v44  ;;  %v1623_v52 = vpop.permute.xlu1 %1622  ;;  %v1639_v32 = vpop.permute.xlu0 %1638 }
 0x303   : > { %v1685_v51 = vsel %vm2685_vm3, %v1544_v36, %v1623_v52  ;;  %v1689_v30 = vsel %vm2685_vm3, %v1564_v3, %v1639_v32 }
 0x304   : > { %v1717_v19 = vmin.f32 %v1701_v63, %v1685_v51  ;;  %v1721_v5 = vmin.f32 %v1705_v50, %v1689_v30 }
 0x306   : > { %1734 = vst.msk [vmem:[%s3346_s19] sm:$0xff] %vm1733_vm7, %v1717_v19  ;;  %1738 = vst.msk [vmem:[%s3346_s19 + $0x20] sm:$0xff] %vm1733_vm7, %v1721_v5  ;;  %v1631_v9 = vpop.permute.xlu1 %1630  ;;  %v1647_v53 = vpop.permute.xlu0 %1646 }
 0x307   : > { %v1687_v29 = vsel %vm2685_vm3, %v1554_v22, %v1631_v9  ;;  %v1691_v25 = vsel %vm2685_vm3, %v1574_v13, %v1647_v53 }
 0x308   : > { %v1719_v37 = vmin.f32 %v1703_v58, %v1687_v29  ;;  %v1723_v42 = vmin.f32 %v1707_v12, %v1691_v25 }
 0x30a   : > { %1736 = vst.msk [vmem:[%s3346_s19 + $0x10] sm:$0xff] %vm1733_vm7, %v1719_v37  ;;  %1740 = vst.msk [vmem:[%s3346_s19 + $0x30] sm:$0xff] %vm1733_vm7, %v1723_v42  ;;  %v1635_v33 = vpop.permute.xlu1 %1634  ;;  %v1655_v55 = vpop.permute.xlu0 %1654 }
 0x30b   : > { %v1688_v59 = vsel %vm2685_vm3, %v1559_v26, %v1635_v33  ;;  %v1693_v10 = vsel %vm2685_vm3, %v1584_v40, %v1655_v55 }
 0x30c   : > { %v1720_v1 = vmin.f32 %v1704_v16, %v1688_v59  ;;  %v1725_v24 = vmin.f32 %v1709_v45, %v1693_v10 }
 0x30e   : > { %1737 = vst.msk [vmem:[%s3346_s19 + $0x18] sm:$0xff] %vm1733_vm7, %v1720_v1  ;;  %1742 = vst.msk [vmem:[%s3346_s19 + $0x40] sm:$0xff] %vm1733_vm7, %v1725_v24  ;;  %v1643_v60 = vpop.permute.xlu1 %1642  ;;  %v1663_v20 = vpop.permute.xlu0 %1662 }
 0x30f   : > { %v1690_v14 = vsel %vm2685_vm3, %v1569_v56, %v1643_v60  ;;  %v1695_v0 = vsel %vm2685_vm3, %v1594_v27, %v1663_v20  ;;  %v1715_v56 = vmax.f32 %v3317_v4, 0.0 }
 0x310   : > { %v1722_v17 = vmin.f32 %v1706_v54, %v1690_v14  ;;  %v1727_v2 = vmin.f32 %v1711_v47, %v1695_v0 }
 0x312   : > { %1739 = vst.msk [vmem:[%s3346_s19 + $0x28] sm:$0xff] %vm1733_vm7, %v1722_v17  ;;  %1744 = vst.msk [vmem:[%s3346_s19 + $0x50] sm:$0xff] %vm1733_vm7, %v1727_v2  ;;  %v1651_v15 = vpop.permute.xlu1 %1650  ;;  %v1671_v8 = vpop.permute.xlu0 %1670 }
 0x313   : > { %v1692_v36 = vsel %vm2685_vm3, %v3329_v39, %v1651_v15  ;;  %v1697_v21 = vsel %vm2685_vm3, %v1604_v7, %v1671_v8 }
 0x314   : > { %v1724_v26 = vmin.f32 %v1708_v28, %v1692_v36  ;;  %v1729_v22 = vmin.f32 %v1713_v23, %v1697_v21 }
 0x316   : > { %1741 = vst.msk [vmem:[%s3346_s19 + $0x38] sm:$0xff] %vm1733_vm7, %v1724_v26  ;;  %1746 = vst.msk [vmem:[%s3346_s19 + $0x60] sm:$0xff] %vm1733_vm7, %v1729_v22  ;;  %v1659_v43 = vpop.permute.xlu1 %1658  ;;  %v1679_v3 = vpop.permute.xlu0 %1678 }
 0x317   : > { %v1694_v39 = vsel %vm2685_vm3, %v3331_v62, %v1659_v43  ;;  %v1699_v13 = vsel %vm2685_vm3, %v3339_v31, %v1679_v3  ;;  %v1714_v62 = vmax.f32 %v3321_v34, 0.0 }
 0x318   : > { %v1726_v40 = vmin.f32 %v1710_v49, %v1694_v39  ;;  %v1731_v27 = vmin.f32 %v1715_v56, %v1699_v13 }
 0x31a   : > { %1743 = vst.msk [vmem:[%s3346_s19 + $0x48] sm:$0xff] %vm1733_vm7, %v1726_v40  ;;  %1748 = vst.msk [vmem:[%s3346_s19 + $0x70] sm:$0xff] %vm1733_vm7, %v1731_v27  ;;  %v1667_v4 = vpop.permute.xlu1 %1666 }
 0x31b   : > { %v1696_v7 = vsel %vm2685_vm3, %v3333_v18, %v1667_v4 }
 0x31c   : > { %v1728_v35 = vmin.f32 %v1712_v11, %v1696_v7 }
 0x31e   : > { %1745 = vst.msk [vmem:[%s3346_s19 + $0x58] sm:$0xff] %vm1733_vm7, %v1728_v35  ;;  %v1675_v31 = vpop.permute.xlu1 %1674 }
 0x31f   : > { %v1698_v41 = vsel %vm2685_vm3, %v3335_v61, %v1675_v31 }
 0x320   : > { %v1730_v38 = vmin.f32 %v1714_v62, %v1698_v41 }
 0x322   : > { %1747 = vst.msk [vmem:[%s3346_s19 + $0x68] sm:$0xff] %vm1733_vm7, %v1730_v38  ;;  %v1683_v44 = vpop.permute.xlu1 %1682 }
 0x323   : > { %v1700_v18 = vsel %vm2685_vm3, %v3337_v48, %v1683_v44 }
 0x324   : > { %v1732_v52 = vmin.f32 %v1716_v6, %v1700_v18 }
 0x326   : > { %1749 = vst.msk [vmem:[%s3346_s19 + $0x78] sm:$0xff] %vm1733_vm7, %v1732_v52 }
 0x327 PF: > { %s16_s18 = sadd.s32 1, %s2042_s18  }
 0x328   : > { %p13_p4 = scmp.ge.s32.totalorder %s16_s18, 6  }
 0x32a   :  { %15 = sbr.rel (!%p13_p4) target bundleno = 1 (0x1), region = 87 }

</bundles_post_ra>
